<compile_context>
chip_gen: v5e
topology: v5e:2x2
jax: 0.10.0
libtpu: 0.0.40
codegen_flags: <defaults>
</compile_context>

<pallas_src>
import math

import jax
import jax.numpy as jnp
from jax.experimental import pallas as pl
from jax.experimental.pallas import tpu as pltpu


# ----------------------------------------------------------------------------
# Fused Pallas kernel: 4 stacked tanh-RNN layers + relu(fc1) -> fc2 head
# ----------------------------------------------------------------------------
def make_fused_kernel(num_rnn_layers: int):
    """Builds the fused kernel.

    Positional ref layout:
      x_ref                                   (B, T, I)   batch-first input
      [w_ih_t, w_hh_t, b] * num_rnn_layers    (I_l, H), (H, H), (1, H)
      fc1_w_t, fc1_b, fc2_w_t, fc2_b          (H, H), (1, H), (H, C), (1, C)
      out_ref                                 (B, C)      logits  (output)
      seq_ref                                 (T*B, H)    VMEM scratch, time-major
    """

    def kernel(*refs):
        x_ref = refs[0]
        idx = 1
        layer_refs = []
        for _ in range(num_rnn_layers):
            layer_refs.append(tuple(refs[idx:idx + 3]))
            idx += 3
        fc1_w_ref, fc1_b_ref, fc2_w_ref, fc2_b_ref = refs[idx:idx + 4]
        idx += 4
        out_ref = refs[idx]
        seq_ref = refs[idx + 1]

        B, T, _ = x_ref.shape
        H = seq_ref.shape[1]

        # ---- layer 0: consumes the batch-first input directly --------------
        w_ih, w_hh, bias = (r[...] for r in layer_refs[0])
        h = jnp.zeros((B, H), jnp.float32)
        for t in range(T):  # fully unrolled; all indices static
            x_t = x_ref[:, t, :]  # (B, I) static slice -> no HBM transpose
            xw_t = jnp.dot(x_t, w_ih, preferred_element_type=jnp.float32) + bias
            h = jnp.tanh(xw_t + jnp.dot(h, w_hh,
                                        preferred_element_type=jnp.float32))
            if num_rnn_layers > 1:
                # time-major rows [t*B, (t+1)*B) of the sequence scratch
                seq_ref[pl.ds(t * B, B), :] = h

        # ---- layers 1..L-1: hoisted input projection (one matmul / layer) --
        for l in range(1, num_rnn_layers):
            w_ih, w_hh, bias = (r[...] for r in layer_refs[l])
            seq = seq_ref[...]  # (T*B, H) previous layer's full sequence
            xw = jnp.dot(seq, w_ih, preferred_element_type=jnp.float32) + bias
            h = jnp.zeros((B, H), jnp.float32)
            last = (l == num_rnn_layers - 1)
            for t in range(T):
                pre = xw[t * B:(t + 1) * B, :] + jnp.dot(
                    h, w_hh, preferred_element_type=jnp.float32)
                h = jnp.tanh(pre)
                if not last:
                    seq_ref[pl.ds(t * B, B), :] = h

        # ---- head: relu(fc1(h_last)); dropout = identity (eval); fc2 -------
        z = jnp.dot(h, fc1_w_ref[...],
                    preferred_element_type=jnp.float32) + fc1_b_ref[...]
        z = jnp.maximum(z, 0.0)
        logits = jnp.dot(z, fc2_w_ref[...],
                         preferred_element_type=jnp.float32) + fc2_b_ref[...]
        out_ref[...] = logits.astype(out_ref.dtype)

    return kernel


# ----------------------------------------------------------------------------
# Wrapper
# ----------------------------------------------------------------------------
def _forward_impl(params, x):
    """x: (B, T, input_size) float32 (batch_first, matching PyTorch).
    Returns logits (B, num_classes)."""
    B, T, _ = x.shape
    layers = list(params["rnn1"]) + list(params["rnn2"])
    H = layers[0][1].shape[0]
    C = params["fc2_w_t"].shape[1]

    args = [x]
    for (w_ih_t, w_hh_t, b) in layers:
        args += [w_ih_t, w_hh_t, b]
    args += [params["fc1_w_t"], params["fc1_b"],
             params["fc2_w_t"], params["fc2_b"]]

    return pl.pallas_call(
        make_fused_kernel(len(layers)),
        out_shape=jax.ShapeDtypeStruct((B, C), jnp.float32),
        scratch_shapes=[pltpu.VMEM((T * B, H), jnp.float32)],
    )(*args)


improved_rnn_forward = jax.jit(_forward_impl)


# ----------------------------------------------------------------------------
# Parameters (PyTorch-style init) and pure-JAX reference
# ----------------------------------------------------------------------------
def init_params(key, input_size, hidden_size, num_layers, num_classes):
    """Deterministic PyTorch-style init (uniform(-1/sqrt(H), 1/sqrt(H)))."""
    params = {"rnn1": [], "rnn2": []}
    stdv = 1.0 / math.sqrt(hidden_size)

    def unif(key, shape, bound):
        return jax.random.uniform(key, shape, jnp.float32, -bound, bound)

    for name, in_size in (("rnn1", input_size), ("rnn2", hidden_size)):
        for layer in range(num_layers):
            isz = in_size if layer == 0 else hidden_size
            key, k1, k2, k3, k4 = jax.random.split(key, 5)
            w_ih_t = unif(k1, (isz, hidden_size), stdv)            # W_ih^T
            w_hh_t = unif(k2, (hidden_size, hidden_size), stdv)    # W_hh^T
            b_ih = unif(k3, (hidden_size,), stdv)
            b_hh = unif(k4, (hidden_size,), stdv)
            b = (b_ih + b_hh).reshape(1, hidden_size)
            params[name].append((w_ih_t, w_hh_t, b))

    key, k1, k2, k3, k4 = jax.random.split(key, 5)
    bnd1 = 1.0 / math.sqrt(hidden_size)
    params["fc1_w_t"] = unif(k1, (hidden_size, hidden_size), bnd1)
    params["fc1_b"] = unif(k2, (hidden_size,), bnd1).reshape(1, hidden_size)
    params["fc2_w_t"] = unif(k3, (hidden_size, num_classes), bnd1)
    params["fc2_b"] = unif(k4, (num_classes,), bnd1).reshape(1, num_classes)
    return params


def reference_forward(params, x):
    out = jnp.transpose(x, (1, 0, 2))  # (T, B, I)
    for stack in ("rnn1", "rnn2"):
        for (w_ih_t, w_hh_t, b) in params[stack]:
            T, B, _ = out.shape
            H = w_hh_t.shape[0]
            h = jnp.zeros((B, H), jnp.float32)
            ys = []
            for t in range(T):
                h = jnp.tanh(out[t] @ w_ih_t + h @ w_hh_t + b)
                ys.append(h)
            out = jnp.stack(ys, axis=0)
    h_last = out[-1]
    z = jnp.maximum(h_last @ params["fc1_w_t"] + params["fc1_b"], 0.0)
    return z @ params["fc2_w_t"] + params["fc2_b"]


# ----------------------------------------------------------------------------
if __name__ == "__main__":
    # Small shapes consistent with the module's forward pass.
    batch, seq = 2, 8
    input_size, hidden_size, num_layers, num_classes = 16, 32, 2, 10

    key = jax.random.PRNGKey(0)
    key, pkey, xkey = jax.random.split(key, 3)
    params = init_params(pkey, input_size, hidden_size, num_layers, num_classes)
    x = jax.random.normal(xkey, (batch, seq, input_size), jnp.float32)

    logits = improved_rnn_forward(params, x)
    logits = jax.block_until_ready(logits)

    ref = reference_forward(params, x)
    assert logits.shape == (batch, num_classes)
    assert jnp.allclose(logits, ref, atol=1e-4, rtol=1e-4), "mismatch vs reference"

    print("KERNEL_OK")
</pallas_src>

<mosaic_0001>
module attributes {stable_mosaic.version = 11 : i64} {
  func.func @kernel(%arg0: memref<2x8x16xf32, #tpu.memory_space<vmem>>, %arg1: memref<16x32xf32, #tpu.memory_space<vmem>>, %arg2: memref<32x32xf32, #tpu.memory_space<vmem>>, %arg3: memref<1x32xf32, #tpu.memory_space<vmem>>, %arg4: memref<32x32xf32, #tpu.memory_space<vmem>>, %arg5: memref<32x32xf32, #tpu.memory_space<vmem>>, %arg6: memref<1x32xf32, #tpu.memory_space<vmem>>, %arg7: memref<32x32xf32, #tpu.memory_space<vmem>>, %arg8: memref<32x32xf32, #tpu.memory_space<vmem>>, %arg9: memref<1x32xf32, #tpu.memory_space<vmem>>, %arg10: memref<32x32xf32, #tpu.memory_space<vmem>>, %arg11: memref<32x32xf32, #tpu.memory_space<vmem>>, %arg12: memref<1x32xf32, #tpu.memory_space<vmem>>, %arg13: memref<32x32xf32, #tpu.memory_space<vmem>>, %arg14: memref<1x32xf32, #tpu.memory_space<vmem>>, %arg15: memref<32x10xf32, #tpu.memory_space<vmem>>, %arg16: memref<1x10xf32, #tpu.memory_space<vmem>>, %arg17: memref<2x10xf32, #tpu.memory_space<vmem>>, %arg18: memref<16x32xf32, #tpu.memory_space<vmem>>) attributes {dimension_semantics = [], scalar_prefetch = 0 : i64, scratch_operands = 1 : i64, tpu.core_type = #tpu.core_type<tc>} {
    %c0 = arith.constant 0 : index
    %c0_0 = arith.constant 0 : index
    %0 = vector.load %arg1[%c0, %c0_0] : memref<16x32xf32, #tpu.memory_space<vmem>>, vector<16x32xf32>
    %c0_1 = arith.constant 0 : index
    %c0_2 = arith.constant 0 : index
    %1 = vector.load %arg2[%c0_1, %c0_2] : memref<32x32xf32, #tpu.memory_space<vmem>>, vector<32x32xf32>
    %c0_3 = arith.constant 0 : index
    %c0_4 = arith.constant 0 : index
    %2 = vector.load %arg3[%c0_3, %c0_4] : memref<1x32xf32, #tpu.memory_space<vmem>>, vector<1x32xf32>
    %cst = arith.constant 0.000000e+00 : f32
    %3 = vector.broadcast %cst : f32 to vector<2x32xf32>
    %c0_5 = arith.constant 0 : index
    %c0_6 = arith.constant 0 : index
    %c0_7 = arith.constant 0 : index
    %4 = vector.load %arg0[%c0_5, %c0_6, %c0_7] : memref<2x8x16xf32, #tpu.memory_space<vmem>>, vector<2x1x16xf32>
    %5 = vector.shape_cast %4 : vector<2x1x16xf32> to vector<2x16xf32>
    %cst_8 = arith.constant dense<0.000000e+00> : vector<2x32xf32>
    %6 = tpu.matmul %5, %0, %cst_8 {dimension_numbers = #tpu.dot_dimension_numbers<[1], [0], [0], [1], [0, 0, 1, 1], [], []>} : vector<2x16xf32>, vector<16x32xf32>, vector<2x32xf32> -> vector<2x32xf32>
    %7 = vector.broadcast %2 : vector<1x32xf32> to vector<2x32xf32>
    %8 = arith.addf %6, %7 : vector<2x32xf32>
    %cst_9 = arith.constant dense<0.000000e+00> : vector<2x32xf32>
    %9 = tpu.matmul %3, %1, %cst_9 {dimension_numbers = #tpu.dot_dimension_numbers<[1], [0], [0], [1], [0, 0, 1, 1], [], []>} : vector<2x32xf32>, vector<32x32xf32>, vector<2x32xf32> -> vector<2x32xf32>
    %10 = arith.addf %8, %9 : vector<2x32xf32>
    %11 = math.tanh %10 : vector<2x32xf32>
    %c0_10 = arith.constant 0 : index
    %c0_11 = arith.constant 0 : index
    %12 = vector.load %arg18[%c0_10, %c0_11] : memref<16x32xf32, #tpu.memory_space<vmem>>, vector<2x32xf32>
    tpu.vector_store %arg18[%c0_10, %c0_11], %11 {strides = array<i32>} : memref<16x32xf32, #tpu.memory_space<vmem>>, vector<2x32xf32>,
    %c0_12 = arith.constant 0 : index
    %c1 = arith.constant 1 : index
    %c0_13 = arith.constant 0 : index
    %13 = vector.load %arg0[%c0_12, %c1, %c0_13] : memref<2x8x16xf32, #tpu.memory_space<vmem>>, vector<2x1x16xf32>
    %14 = vector.shape_cast %13 : vector<2x1x16xf32> to vector<2x16xf32>
    %cst_14 = arith.constant dense<0.000000e+00> : vector<2x32xf32>
    %15 = tpu.matmul %14, %0, %cst_14 {dimension_numbers = #tpu.dot_dimension_numbers<[1], [0], [0], [1], [0, 0, 1, 1], [], []>} : vector<2x16xf32>, vector<16x32xf32>, vector<2x32xf32> -> vector<2x32xf32>
    %16 = vector.broadcast %2 : vector<1x32xf32> to vector<2x32xf32>
    %17 = arith.addf %15, %16 : vector<2x32xf32>
    %cst_15 = arith.constant dense<0.000000e+00> : vector<2x32xf32>
    %18 = tpu.matmul %11, %1, %cst_15 {dimension_numbers = #tpu.dot_dimension_numbers<[1], [0], [0], [1], [0, 0, 1, 1], [], []>} : vector<2x32xf32>, vector<32x32xf32>, vector<2x32xf32> -> vector<2x32xf32>
    %19 = arith.addf %17, %18 : vector<2x32xf32>
    %20 = math.tanh %19 : vector<2x32xf32>
    %c2 = arith.constant 2 : index
    %c0_16 = arith.constant 0 : index
    %21 = vector.load %arg18[%c2, %c0_16] : memref<16x32xf32, #tpu.memory_space<vmem>>, vector<2x32xf32>
    tpu.vector_store %arg18[%c2, %c0_16], %20 {strides = array<i32>} : memref<16x32xf32, #tpu.memory_space<vmem>>, vector<2x32xf32>,
    %c0_17 = arith.constant 0 : index
    %c2_18 = arith.constant 2 : index
    %c0_19 = arith.constant 0 : index
    %22 = vector.load %arg0[%c0_17, %c2_18, %c0_19] : memref<2x8x16xf32, #tpu.memory_space<vmem>>, vector<2x1x16xf32>
    %23 = vector.shape_cast %22 : vector<2x1x16xf32> to vector<2x16xf32>
    %cst_20 = arith.constant dense<0.000000e+00> : vector<2x32xf32>
    %24 = tpu.matmul %23, %0, %cst_20 {dimension_numbers = #tpu.dot_dimension_numbers<[1], [0], [0], [1], [0, 0, 1, 1], [], []>} : vector<2x16xf32>, vector<16x32xf32>, vector<2x32xf32> -> vector<2x32xf32>
    %25 = vector.broadcast %2 : vector<1x32xf32> to vector<2x32xf32>
    %26 = arith.addf %24, %25 : vector<2x32xf32>
    %cst_21 = arith.constant dense<0.000000e+00> : vector<2x32xf32>
    %27 = tpu.matmul %20, %1, %cst_21 {dimension_numbers = #tpu.dot_dimension_numbers<[1], [0], [0], [1], [0, 0, 1, 1], [], []>} : vector<2x32xf32>, vector<32x32xf32>, vector<2x32xf32> -> vector<2x32xf32>
    %28 = arith.addf %26, %27 : vector<2x32xf32>
    %29 = math.tanh %28 : vector<2x32xf32>
    %c4 = arith.constant 4 : index
    %c0_22 = arith.constant 0 : index
    %30 = vector.load %arg18[%c4, %c0_22] : memref<16x32xf32, #tpu.memory_space<vmem>>, vector<2x32xf32>
    tpu.vector_store %arg18[%c4, %c0_22], %29 {strides = array<i32>} : memref<16x32xf32, #tpu.memory_space<vmem>>, vector<2x32xf32>,
    %c0_23 = arith.constant 0 : index
    %c3 = arith.constant 3 : index
    %c0_24 = arith.constant 0 : index
    %31 = vector.load %arg0[%c0_23, %c3, %c0_24] : memref<2x8x16xf32, #tpu.memory_space<vmem>>, vector<2x1x16xf32>
    %32 = vector.shape_cast %31 : vector<2x1x16xf32> to vector<2x16xf32>
    %cst_25 = arith.constant dense<0.000000e+00> : vector<2x32xf32>
    %33 = tpu.matmul %32, %0, %cst_25 {dimension_numbers = #tpu.dot_dimension_numbers<[1], [0], [0], [1], [0, 0, 1, 1], [], []>} : vector<2x16xf32>, vector<16x32xf32>, vector<2x32xf32> -> vector<2x32xf32>
    %34 = vector.broadcast %2 : vector<1x32xf32> to vector<2x32xf32>
    %35 = arith.addf %33, %34 : vector<2x32xf32>
    %cst_26 = arith.constant dense<0.000000e+00> : vector<2x32xf32>
    %36 = tpu.matmul %29, %1, %cst_26 {dimension_numbers = #tpu.dot_dimension_numbers<[1], [0], [0], [1], [0, 0, 1, 1], [], []>} : vector<2x32xf32>, vector<32x32xf32>, vector<2x32xf32> -> vector<2x32xf32>
    %37 = arith.addf %35, %36 : vector<2x32xf32>
    %38 = math.tanh %37 : vector<2x32xf32>
    %c6 = arith.constant 6 : index
    %c0_27 = arith.constant 0 : index
    %39 = vector.load %arg18[%c6, %c0_27] : memref<16x32xf32, #tpu.memory_space<vmem>>, vector<2x32xf32>
    tpu.vector_store %arg18[%c6, %c0_27], %38 {strides = array<i32>} : memref<16x32xf32, #tpu.memory_space<vmem>>, vector<2x32xf32>,
    %c0_28 = arith.constant 0 : index
    %c4_29 = arith.constant 4 : index
    %c0_30 = arith.constant 0 : index
    %40 = vector.load %arg0[%c0_28, %c4_29, %c0_30] : memref<2x8x16xf32, #tpu.memory_space<vmem>>, vector<2x1x16xf32>
    %41 = vector.shape_cast %40 : vector<2x1x16xf32> to vector<2x16xf32>
    %cst_31 = arith.constant dense<0.000000e+00> : vector<2x32xf32>
    %42 = tpu.matmul %41, %0, %cst_31 {dimension_numbers = #tpu.dot_dimension_numbers<[1], [0], [0], [1], [0, 0, 1, 1], [], []>} : vector<2x16xf32>, vector<16x32xf32>, vector<2x32xf32> -> vector<2x32xf32>
    %43 = vector.broadcast %2 : vector<1x32xf32> to vector<2x32xf32>
    %44 = arith.addf %42, %43 : vector<2x32xf32>
    %cst_32 = arith.constant dense<0.000000e+00> : vector<2x32xf32>
    %45 = tpu.matmul %38, %1, %cst_32 {dimension_numbers = #tpu.dot_dimension_numbers<[1], [0], [0], [1], [0, 0, 1, 1], [], []>} : vector<2x32xf32>, vector<32x32xf32>, vector<2x32xf32> -> vector<2x32xf32>
    %46 = arith.addf %44, %45 : vector<2x32xf32>
    %47 = math.tanh %46 : vector<2x32xf32>
    %c8 = arith.constant 8 : index
    %c0_33 = arith.constant 0 : index
    %48 = vector.load %arg18[%c8, %c0_33] : memref<16x32xf32, #tpu.memory_space<vmem>>, vector<2x32xf32>
    tpu.vector_store %arg18[%c8, %c0_33], %47 {strides = array<i32>} : memref<16x32xf32, #tpu.memory_space<vmem>>, vector<2x32xf32>,
    %c0_34 = arith.constant 0 : index
    %c5 = arith.constant 5 : index
    %c0_35 = arith.constant 0 : index
    %49 = vector.load %arg0[%c0_34, %c5, %c0_35] : memref<2x8x16xf32, #tpu.memory_space<vmem>>, vector<2x1x16xf32>
    %50 = vector.shape_cast %49 : vector<2x1x16xf32> to vector<2x16xf32>
    %cst_36 = arith.constant dense<0.000000e+00> : vector<2x32xf32>
    %51 = tpu.matmul %50, %0, %cst_36 {dimension_numbers = #tpu.dot_dimension_numbers<[1], [0], [0], [1], [0, 0, 1, 1], [], []>} : vector<2x16xf32>, vector<16x32xf32>, vector<2x32xf32> -> vector<2x32xf32>
    %52 = vector.broadcast %2 : vector<1x32xf32> to vector<2x32xf32>
    %53 = arith.addf %51, %52 : vector<2x32xf32>
    %cst_37 = arith.constant dense<0.000000e+00> : vector<2x32xf32>
    %54 = tpu.matmul %47, %1, %cst_37 {dimension_numbers = #tpu.dot_dimension_numbers<[1], [0], [0], [1], [0, 0, 1, 1], [], []>} : vector<2x32xf32>, vector<32x32xf32>, vector<2x32xf32> -> vector<2x32xf32>
    %55 = arith.addf %53, %54 : vector<2x32xf32>
    %56 = math.tanh %55 : vector<2x32xf32>
    %c10 = arith.constant 10 : index
    %c0_38 = arith.constant 0 : index
    %57 = vector.load %arg18[%c10, %c0_38] : memref<16x32xf32, #tpu.memory_space<vmem>>, vector<2x32xf32>
    tpu.vector_store %arg18[%c10, %c0_38], %56 {strides = array<i32>} : memref<16x32xf32, #tpu.memory_space<vmem>>, vector<2x32xf32>,
    %c0_39 = arith.constant 0 : index
    %c6_40 = arith.constant 6 : index
    %c0_41 = arith.constant 0 : index
    %58 = vector.load %arg0[%c0_39, %c6_40, %c0_41] : memref<2x8x16xf32, #tpu.memory_space<vmem>>, vector<2x1x16xf32>
    %59 = vector.shape_cast %58 : vector<2x1x16xf32> to vector<2x16xf32>
    %cst_42 = arith.constant dense<0.000000e+00> : vector<2x32xf32>
    %60 = tpu.matmul %59, %0, %cst_42 {dimension_numbers = #tpu.dot_dimension_numbers<[1], [0], [0], [1], [0, 0, 1, 1], [], []>} : vector<2x16xf32>, vector<16x32xf32>, vector<2x32xf32> -> vector<2x32xf32>
    %61 = vector.broadcast %2 : vector<1x32xf32> to vector<2x32xf32>
    %62 = arith.addf %60, %61 : vector<2x32xf32>
    %cst_43 = arith.constant dense<0.000000e+00> : vector<2x32xf32>
    %63 = tpu.matmul %56, %1, %cst_43 {dimension_numbers = #tpu.dot_dimension_numbers<[1], [0], [0], [1], [0, 0, 1, 1], [], []>} : vector<2x32xf32>, vector<32x32xf32>, vector<2x32xf32> -> vector<2x32xf32>
    %64 = arith.addf %62, %63 : vector<2x32xf32>
    %65 = math.tanh %64 : vector<2x32xf32>
    %c12 = arith.constant 12 : index
    %c0_44 = arith.constant 0 : index
    %66 = vector.load %arg18[%c12, %c0_44] : memref<16x32xf32, #tpu.memory_space<vmem>>, vector<2x32xf32>
    tpu.vector_store %arg18[%c12, %c0_44], %65 {strides = array<i32>} : memref<16x32xf32, #tpu.memory_space<vmem>>, vector<2x32xf32>,
    %c0_45 = arith.constant 0 : index
    %c7 = arith.constant 7 : index
    %c0_46 = arith.constant 0 : index
    %67 = vector.load %arg0[%c0_45, %c7, %c0_46] : memref<2x8x16xf32, #tpu.memory_space<vmem>>, vector<2x1x16xf32>
    %68 = vector.shape_cast %67 : vector<2x1x16xf32> to vector<2x16xf32>
    %cst_47 = arith.constant dense<0.000000e+00> : vector<2x32xf32>
    %69 = tpu.matmul %68, %0, %cst_47 {dimension_numbers = #tpu.dot_dimension_numbers<[1], [0], [0], [1], [0, 0, 1, 1], [], []>} : vector<2x16xf32>, vector<16x32xf32>, vector<2x32xf32> -> vector<2x32xf32>
    %70 = vector.broadcast %2 : vector<1x32xf32> to vector<2x32xf32>
    %71 = arith.addf %69, %70 : vector<2x32xf32>
    %cst_48 = arith.constant dense<0.000000e+00> : vector<2x32xf32>
    %72 = tpu.matmul %65, %1, %cst_48 {dimension_numbers = #tpu.dot_dimension_numbers<[1], [0], [0], [1], [0, 0, 1, 1], [], []>} : vector<2x32xf32>, vector<32x32xf32>, vector<2x32xf32> -> vector<2x32xf32>
    %73 = arith.addf %71, %72 : vector<2x32xf32>
    %74 = math.tanh %73 : vector<2x32xf32>
    %c14 = arith.constant 14 : index
    %c0_49 = arith.constant 0 : index
    %75 = vector.load %arg18[%c14, %c0_49] : memref<16x32xf32, #tpu.memory_space<vmem>>, vector<2x32xf32>
    tpu.vector_store %arg18[%c14, %c0_49], %74 {strides = array<i32>} : memref<16x32xf32, #tpu.memory_space<vmem>>, vector<2x32xf32>,
    %c0_50 = arith.constant 0 : index
    %c0_51 = arith.constant 0 : index
    %76 = vector.load %arg4[%c0_50, %c0_51] : memref<32x32xf32, #tpu.memory_space<vmem>>, vector<32x32xf32>
    %c0_52 = arith.constant 0 : index
    %c0_53 = arith.constant 0 : index
    %77 = vector.load %arg5[%c0_52, %c0_53] : memref<32x32xf32, #tpu.memory_space<vmem>>, vector<32x32xf32>
    %c0_54 = arith.constant 0 : index
    %c0_55 = arith.constant 0 : index
    %78 = vector.load %arg6[%c0_54, %c0_55] : memref<1x32xf32, #tpu.memory_space<vmem>>, vector<1x32xf32>
    %c0_56 = arith.constant 0 : index
    %c0_57 = arith.constant 0 : index
    %79 = vector.load %arg18[%c0_56, %c0_57] : memref<16x32xf32, #tpu.memory_space<vmem>>, vector<16x32xf32>
    %cst_58 = arith.constant dense<0.000000e+00> : vector<16x32xf32>
    %80 = tpu.matmul %79, %76, %cst_58 {dimension_numbers = #tpu.dot_dimension_numbers<[1], [0], [0], [1], [0, 0, 1, 1], [], []>} : vector<16x32xf32>, vector<32x32xf32>, vector<16x32xf32> -> vector<16x32xf32>
    %81 = vector.broadcast %78 : vector<1x32xf32> to vector<16x32xf32>
    %82 = arith.addf %80, %81 : vector<16x32xf32>
    %cst_59 = arith.constant 0.000000e+00 : f32
    %83 = vector.broadcast %cst_59 : f32 to vector<2x32xf32>
    %84 = vector.extract_strided_slice %82 {offsets = [0, 0], sizes = [2, 32], strides = [1, 1]} : vector<16x32xf32> to vector<2x32xf32>
    %cst_60 = arith.constant dense<0.000000e+00> : vector<2x32xf32>
    %85 = tpu.matmul %83, %77, %cst_60 {dimension_numbers = #tpu.dot_dimension_numbers<[1], [0], [0], [1], [0, 0, 1, 1], [], []>} : vector<2x32xf32>, vector<32x32xf32>, vector<2x32xf32> -> vector<2x32xf32>
    %86 = arith.addf %84, %85 : vector<2x32xf32>
    %87 = math.tanh %86 : vector<2x32xf32>
    %c0_61 = arith.constant 0 : index
    %c0_62 = arith.constant 0 : index
    %88 = vector.load %arg18[%c0_61, %c0_62] : memref<16x32xf32, #tpu.memory_space<vmem>>, vector<2x32xf32>
    tpu.vector_store %arg18[%c0_61, %c0_62], %87 {strides = array<i32>} : memref<16x32xf32, #tpu.memory_space<vmem>>, vector<2x32xf32>,
    %89 = vector.extract_strided_slice %82 {offsets = [2, 0], sizes = [2, 32], strides = [1, 1]} : vector<16x32xf32> to vector<2x32xf32>
    %cst_63 = arith.constant dense<0.000000e+00> : vector<2x32xf32>
    %90 = tpu.matmul %87, %77, %cst_63 {dimension_numbers = #tpu.dot_dimension_numbers<[1], [0], [0], [1], [0, 0, 1, 1], [], []>} : vector<2x32xf32>, vector<32x32xf32>, vector<2x32xf32> -> vector<2x32xf32>
    %91 = arith.addf %89, %90 : vector<2x32xf32>
    %92 = math.tanh %91 : vector<2x32xf32>
    %c2_64 = arith.constant 2 : index
    %c0_65 = arith.constant 0 : index
    %93 = vector.load %arg18[%c2_64, %c0_65] : memref<16x32xf32, #tpu.memory_space<vmem>>, vector<2x32xf32>
    tpu.vector_store %arg18[%c2_64, %c0_65], %92 {strides = array<i32>} : memref<16x32xf32, #tpu.memory_space<vmem>>, vector<2x32xf32>,
    %94 = vector.extract_strided_slice %82 {offsets = [4, 0], sizes = [2, 32], strides = [1, 1]} : vector<16x32xf32> to vector<2x32xf32>
    %cst_66 = arith.constant dense<0.000000e+00> : vector<2x32xf32>
    %95 = tpu.matmul %92, %77, %cst_66 {dimension_numbers = #tpu.dot_dimension_numbers<[1], [0], [0], [1], [0, 0, 1, 1], [], []>} : vector<2x32xf32>, vector<32x32xf32>, vector<2x32xf32> -> vector<2x32xf32>
    %96 = arith.addf %94, %95 : vector<2x32xf32>
    %97 = math.tanh %96 : vector<2x32xf32>
    %c4_67 = arith.constant 4 : index
    %c0_68 = arith.constant 0 : index
    %98 = vector.load %arg18[%c4_67, %c0_68] : memref<16x32xf32, #tpu.memory_space<vmem>>, vector<2x32xf32>
    tpu.vector_store %arg18[%c4_67, %c0_68], %97 {strides = array<i32>} : memref<16x32xf32, #tpu.memory_space<vmem>>, vector<2x32xf32>,
    %99 = vector.extract_strided_slice %82 {offsets = [6, 0], sizes = [2, 32], strides = [1, 1]} : vector<16x32xf32> to vector<2x32xf32>
    %cst_69 = arith.constant dense<0.000000e+00> : vector<2x32xf32>
    %100 = tpu.matmul %97, %77, %cst_69 {dimension_numbers = #tpu.dot_dimension_numbers<[1], [0], [0], [1], [0, 0, 1, 1], [], []>} : vector<2x32xf32>, vector<32x32xf32>, vector<2x32xf32> -> vector<2x32xf32>
    %101 = arith.addf %99, %100 : vector<2x32xf32>
    %102 = math.tanh %101 : vector<2x32xf32>
    %c6_70 = arith.constant 6 : index
    %c0_71 = arith.constant 0 : index
    %103 = vector.load %arg18[%c6_70, %c0_71] : memref<16x32xf32, #tpu.memory_space<vmem>>, vector<2x32xf32>
    tpu.vector_store %arg18[%c6_70, %c0_71], %102 {strides = array<i32>} : memref<16x32xf32, #tpu.memory_space<vmem>>, vector<2x32xf32>,
    %104 = vector.extract_strided_slice %82 {offsets = [8, 0], sizes = [2, 32], strides = [1, 1]} : vector<16x32xf32> to vector<2x32xf32>
    %cst_72 = arith.constant dense<0.000000e+00> : vector<2x32xf32>
    %105 = tpu.matmul %102, %77, %cst_72 {dimension_numbers = #tpu.dot_dimension_numbers<[1], [0], [0], [1], [0, 0, 1, 1], [], []>} : vector<2x32xf32>, vector<32x32xf32>, vector<2x32xf32> -> vector<2x32xf32>
    %106 = arith.addf %104, %105 : vector<2x32xf32>
    %107 = math.tanh %106 : vector<2x32xf32>
    %c8_73 = arith.constant 8 : index
    %c0_74 = arith.constant 0 : index
    %108 = vector.load %arg18[%c8_73, %c0_74] : memref<16x32xf32, #tpu.memory_space<vmem>>, vector<2x32xf32>
    tpu.vector_store %arg18[%c8_73, %c0_74], %107 {strides = array<i32>} : memref<16x32xf32, #tpu.memory_space<vmem>>, vector<2x32xf32>,
    %109 = vector.extract_strided_slice %82 {offsets = [10, 0], sizes = [2, 32], strides = [1, 1]} : vector<16x32xf32> to vector<2x32xf32>
    %cst_75 = arith.constant dense<0.000000e+00> : vector<2x32xf32>
    %110 = tpu.matmul %107, %77, %cst_75 {dimension_numbers = #tpu.dot_dimension_numbers<[1], [0], [0], [1], [0, 0, 1, 1], [], []>} : vector<2x32xf32>, vector<32x32xf32>, vector<2x32xf32> -> vector<2x32xf32>
    %111 = arith.addf %109, %110 : vector<2x32xf32>
    %112 = math.tanh %111 : vector<2x32xf32>
    %c10_76 = arith.constant 10 : index
    %c0_77 = arith.constant 0 : index
    %113 = vector.load %arg18[%c10_76, %c0_77] : memref<16x32xf32, #tpu.memory_space<vmem>>, vector<2x32xf32>
    tpu.vector_store %arg18[%c10_76, %c0_77], %112 {strides = array<i32>} : memref<16x32xf32, #tpu.memory_space<vmem>>, vector<2x32xf32>,
    %114 = vector.extract_strided_slice %82 {offsets = [12, 0], sizes = [2, 32], strides = [1, 1]} : vector<16x32xf32> to vector<2x32xf32>
    %cst_78 = arith.constant dense<0.000000e+00> : vector<2x32xf32>
    %115 = tpu.matmul %112, %77, %cst_78 {dimension_numbers = #tpu.dot_dimension_numbers<[1], [0], [0], [1], [0, 0, 1, 1], [], []>} : vector<2x32xf32>, vector<32x32xf32>, vector<2x32xf32> -> vector<2x32xf32>
    %116 = arith.addf %114, %115 : vector<2x32xf32>
    %117 = math.tanh %116 : vector<2x32xf32>
    %c12_79 = arith.constant 12 : index
    %c0_80 = arith.constant 0 : index
    %118 = vector.load %arg18[%c12_79, %c0_80] : memref<16x32xf32, #tpu.memory_space<vmem>>, vector<2x32xf32>
    tpu.vector_store %arg18[%c12_79, %c0_80], %117 {strides = array<i32>} : memref<16x32xf32, #tpu.memory_space<vmem>>, vector<2x32xf32>,
    %119 = vector.extract_strided_slice %82 {offsets = [14, 0], sizes = [2, 32], strides = [1, 1]} : vector<16x32xf32> to vector<2x32xf32>
    %cst_81 = arith.constant dense<0.000000e+00> : vector<2x32xf32>
    %120 = tpu.matmul %117, %77, %cst_81 {dimension_numbers = #tpu.dot_dimension_numbers<[1], [0], [0], [1], [0, 0, 1, 1], [], []>} : vector<2x32xf32>, vector<32x32xf32>, vector<2x32xf32> -> vector<2x32xf32>
    %121 = arith.addf %119, %120 : vector<2x32xf32>
    %122 = math.tanh %121 : vector<2x32xf32>
    %c14_82 = arith.constant 14 : index
    %c0_83 = arith.constant 0 : index
    %123 = vector.load %arg18[%c14_82, %c0_83] : memref<16x32xf32, #tpu.memory_space<vmem>>, vector<2x32xf32>
    tpu.vector_store %arg18[%c14_82, %c0_83], %122 {strides = array<i32>} : memref<16x32xf32, #tpu.memory_space<vmem>>, vector<2x32xf32>,
    %c0_84 = arith.constant 0 : index
    %c0_85 = arith.constant 0 : index
    %124 = vector.load %arg7[%c0_84, %c0_85] : memref<32x32xf32, #tpu.memory_space<vmem>>, vector<32x32xf32>
    %c0_86 = arith.constant 0 : index
    %c0_87 = arith.constant 0 : index
    %125 = vector.load %arg8[%c0_86, %c0_87] : memref<32x32xf32, #tpu.memory_space<vmem>>, vector<32x32xf32>
    %c0_88 = arith.constant 0 : index
    %c0_89 = arith.constant 0 : index
    %126 = vector.load %arg9[%c0_88, %c0_89] : memref<1x32xf32, #tpu.memory_space<vmem>>, vector<1x32xf32>
    %c0_90 = arith.constant 0 : index
    %c0_91 = arith.constant 0 : index
    %127 = vector.load %arg18[%c0_90, %c0_91] : memref<16x32xf32, #tpu.memory_space<vmem>>, vector<16x32xf32>
    %cst_92 = arith.constant dense<0.000000e+00> : vector<16x32xf32>
    %128 = tpu.matmul %127, %124, %cst_92 {dimension_numbers = #tpu.dot_dimension_numbers<[1], [0], [0], [1], [0, 0, 1, 1], [], []>} : vector<16x32xf32>, vector<32x32xf32>, vector<16x32xf32> -> vector<16x32xf32>
    %129 = vector.broadcast %126 : vector<1x32xf32> to vector<16x32xf32>
    %130 = arith.addf %128, %129 : vector<16x32xf32>
    %cst_93 = arith.constant 0.000000e+00 : f32
    %131 = vector.broadcast %cst_93 : f32 to vector<2x32xf32>
    %132 = vector.extract_strided_slice %130 {offsets = [0, 0], sizes = [2, 32], strides = [1, 1]} : vector<16x32xf32> to vector<2x32xf32>
    %cst_94 = arith.constant dense<0.000000e+00> : vector<2x32xf32>
    %133 = tpu.matmul %131, %125, %cst_94 {dimension_numbers = #tpu.dot_dimension_numbers<[1], [0], [0], [1], [0, 0, 1, 1], [], []>} : vector<2x32xf32>, vector<32x32xf32>, vector<2x32xf32> -> vector<2x32xf32>
    %134 = arith.addf %132, %133 : vector<2x32xf32>
    %135 = math.tanh %134 : vector<2x32xf32>
    %c0_95 = arith.constant 0 : index
    %c0_96 = arith.constant 0 : index
    %136 = vector.load %arg18[%c0_95, %c0_96] : memref<16x32xf32, #tpu.memory_space<vmem>>, vector<2x32xf32>
    tpu.vector_store %arg18[%c0_95, %c0_96], %135 {strides = array<i32>} : memref<16x32xf32, #tpu.memory_space<vmem>>, vector<2x32xf32>,
    %137 = vector.extract_strided_slice %130 {offsets = [2, 0], sizes = [2, 32], strides = [1, 1]} : vector<16x32xf32> to vector<2x32xf32>
    %cst_97 = arith.constant dense<0.000000e+00> : vector<2x32xf32>
    %138 = tpu.matmul %135, %125, %cst_97 {dimension_numbers = #tpu.dot_dimension_numbers<[1], [0], [0], [1], [0, 0, 1, 1], [], []>} : vector<2x32xf32>, vector<32x32xf32>, vector<2x32xf32> -> vector<2x32xf32>
    %139 = arith.addf %137, %138 : vector<2x32xf32>
    %140 = math.tanh %139 : vector<2x32xf32>
    %c2_98 = arith.constant 2 : index
    %c0_99 = arith.constant 0 : index
    %141 = vector.load %arg18[%c2_98, %c0_99] : memref<16x32xf32, #tpu.memory_space<vmem>>, vector<2x32xf32>
    tpu.vector_store %arg18[%c2_98, %c0_99], %140 {strides = array<i32>} : memref<16x32xf32, #tpu.memory_space<vmem>>, vector<2x32xf32>,
    %142 = vector.extract_strided_slice %130 {offsets = [4, 0], sizes = [2, 32], strides = [1, 1]} : vector<16x32xf32> to vector<2x32xf32>
    %cst_100 = arith.constant dense<0.000000e+00> : vector<2x32xf32>
    %143 = tpu.matmul %140, %125, %cst_100 {dimension_numbers = #tpu.dot_dimension_numbers<[1], [0], [0], [1], [0, 0, 1, 1], [], []>} : vector<2x32xf32>, vector<32x32xf32>, vector<2x32xf32> -> vector<2x32xf32>
    %144 = arith.addf %142, %143 : vector<2x32xf32>
    %145 = math.tanh %144 : vector<2x32xf32>
    %c4_101 = arith.constant 4 : index
    %c0_102 = arith.constant 0 : index
    %146 = vector.load %arg18[%c4_101, %c0_102] : memref<16x32xf32, #tpu.memory_space<vmem>>, vector<2x32xf32>
    tpu.vector_store %arg18[%c4_101, %c0_102], %145 {strides = array<i32>} : memref<16x32xf32, #tpu.memory_space<vmem>>, vector<2x32xf32>,
    %147 = vector.extract_strided_slice %130 {offsets = [6, 0], sizes = [2, 32], strides = [1, 1]} : vector<16x32xf32> to vector<2x32xf32>
    %cst_103 = arith.constant dense<0.000000e+00> : vector<2x32xf32>
    %148 = tpu.matmul %145, %125, %cst_103 {dimension_numbers = #tpu.dot_dimension_numbers<[1], [0], [0], [1], [0, 0, 1, 1], [], []>} : vector<2x32xf32>, vector<32x32xf32>, vector<2x32xf32> -> vector<2x32xf32>
    %149 = arith.addf %147, %148 : vector<2x32xf32>
    %150 = math.tanh %149 : vector<2x32xf32>
    %c6_104 = arith.constant 6 : index
    %c0_105 = arith.constant 0 : index
    %151 = vector.load %arg18[%c6_104, %c0_105] : memref<16x32xf32, #tpu.memory_space<vmem>>, vector<2x32xf32>
    tpu.vector_store %arg18[%c6_104, %c0_105], %150 {strides = array<i32>} : memref<16x32xf32, #tpu.memory_space<vmem>>, vector<2x32xf32>,
    %152 = vector.extract_strided_slice %130 {offsets = [8, 0], sizes = [2, 32], strides = [1, 1]} : vector<16x32xf32> to vector<2x32xf32>
    %cst_106 = arith.constant dense<0.000000e+00> : vector<2x32xf32>
    %153 = tpu.matmul %150, %125, %cst_106 {dimension_numbers = #tpu.dot_dimension_numbers<[1], [0], [0], [1], [0, 0, 1, 1], [], []>} : vector<2x32xf32>, vector<32x32xf32>, vector<2x32xf32> -> vector<2x32xf32>
    %154 = arith.addf %152, %153 : vector<2x32xf32>
    %155 = math.tanh %154 : vector<2x32xf32>
    %c8_107 = arith.constant 8 : index
    %c0_108 = arith.constant 0 : index
    %156 = vector.load %arg18[%c8_107, %c0_108] : memref<16x32xf32, #tpu.memory_space<vmem>>, vector<2x32xf32>
    tpu.vector_store %arg18[%c8_107, %c0_108], %155 {strides = array<i32>} : memref<16x32xf32, #tpu.memory_space<vmem>>, vector<2x32xf32>,
    %157 = vector.extract_strided_slice %130 {offsets = [10, 0], sizes = [2, 32], strides = [1, 1]} : vector<16x32xf32> to vector<2x32xf32>
    %cst_109 = arith.constant dense<0.000000e+00> : vector<2x32xf32>
    %158 = tpu.matmul %155, %125, %cst_109 {dimension_numbers = #tpu.dot_dimension_numbers<[1], [0], [0], [1], [0, 0, 1, 1], [], []>} : vector<2x32xf32>, vector<32x32xf32>, vector<2x32xf32> -> vector<2x32xf32>
    %159 = arith.addf %157, %158 : vector<2x32xf32>
    %160 = math.tanh %159 : vector<2x32xf32>
    %c10_110 = arith.constant 10 : index
    %c0_111 = arith.constant 0 : index
    %161 = vector.load %arg18[%c10_110, %c0_111] : memref<16x32xf32, #tpu.memory_space<vmem>>, vector<2x32xf32>
    tpu.vector_store %arg18[%c10_110, %c0_111], %160 {strides = array<i32>} : memref<16x32xf32, #tpu.memory_space<vmem>>, vector<2x32xf32>,
    %162 = vector.extract_strided_slice %130 {offsets = [12, 0], sizes = [2, 32], strides = [1, 1]} : vector<16x32xf32> to vector<2x32xf32>
    %cst_112 = arith.constant dense<0.000000e+00> : vector<2x32xf32>
    %163 = tpu.matmul %160, %125, %cst_112 {dimension_numbers = #tpu.dot_dimension_numbers<[1], [0], [0], [1], [0, 0, 1, 1], [], []>} : vector<2x32xf32>, vector<32x32xf32>, vector<2x32xf32> -> vector<2x32xf32>
    %164 = arith.addf %162, %163 : vector<2x32xf32>
    %165 = math.tanh %164 : vector<2x32xf32>
    %c12_113 = arith.constant 12 : index
    %c0_114 = arith.constant 0 : index
    %166 = vector.load %arg18[%c12_113, %c0_114] : memref<16x32xf32, #tpu.memory_space<vmem>>, vector<2x32xf32>
    tpu.vector_store %arg18[%c12_113, %c0_114], %165 {strides = array<i32>} : memref<16x32xf32, #tpu.memory_space<vmem>>, vector<2x32xf32>,
    %167 = vector.extract_strided_slice %130 {offsets = [14, 0], sizes = [2, 32], strides = [1, 1]} : vector<16x32xf32> to vector<2x32xf32>
    %cst_115 = arith.constant dense<0.000000e+00> : vector<2x32xf32>
    %168 = tpu.matmul %165, %125, %cst_115 {dimension_numbers = #tpu.dot_dimension_numbers<[1], [0], [0], [1], [0, 0, 1, 1], [], []>} : vector<2x32xf32>, vector<32x32xf32>, vector<2x32xf32> -> vector<2x32xf32>
    %169 = arith.addf %167, %168 : vector<2x32xf32>
    %170 = math.tanh %169 : vector<2x32xf32>
    %c14_116 = arith.constant 14 : index
    %c0_117 = arith.constant 0 : index
    %171 = vector.load %arg18[%c14_116, %c0_117] : memref<16x32xf32, #tpu.memory_space<vmem>>, vector<2x32xf32>
    tpu.vector_store %arg18[%c14_116, %c0_117], %170 {strides = array<i32>} : memref<16x32xf32, #tpu.memory_space<vmem>>, vector<2x32xf32>,
    %c0_118 = arith.constant 0 : index
    %c0_119 = arith.constant 0 : index
    %172 = vector.load %arg10[%c0_118, %c0_119] : memref<32x32xf32, #tpu.memory_space<vmem>>, vector<32x32xf32>
    %c0_120 = arith.constant 0 : index
    %c0_121 = arith.constant 0 : index
    %173 = vector.load %arg11[%c0_120, %c0_121] : memref<32x32xf32, #tpu.memory_space<vmem>>, vector<32x32xf32>
    %c0_122 = arith.constant 0 : index
    %c0_123 = arith.constant 0 : index
    %174 = vector.load %arg12[%c0_122, %c0_123] : memref<1x32xf32, #tpu.memory_space<vmem>>, vector<1x32xf32>
    %c0_124 = arith.constant 0 : index
    %c0_125 = arith.constant 0 : index
    %175 = vector.load %arg18[%c0_124, %c0_125] : memref<16x32xf32, #tpu.memory_space<vmem>>, vector<16x32xf32>
    %cst_126 = arith.constant dense<0.000000e+00> : vector<16x32xf32>
    %176 = tpu.matmul %175, %172, %cst_126 {dimension_numbers = #tpu.dot_dimension_numbers<[1], [0], [0], [1], [0, 0, 1, 1], [], []>} : vector<16x32xf32>, vector<32x32xf32>, vector<16x32xf32> -> vector<16x32xf32>
    %177 = vector.broadcast %174 : vector<1x32xf32> to vector<16x32xf32>
    %178 = arith.addf %176, %177 : vector<16x32xf32>
    %cst_127 = arith.constant 0.000000e+00 : f32
    %179 = vector.broadcast %cst_127 : f32 to vector<2x32xf32>
    %180 = vector.extract_strided_slice %178 {offsets = [0, 0], sizes = [2, 32], strides = [1, 1]} : vector<16x32xf32> to vector<2x32xf32>
    %cst_128 = arith.constant dense<0.000000e+00> : vector<2x32xf32>
    %181 = tpu.matmul %179, %173, %cst_128 {dimension_numbers = #tpu.dot_dimension_numbers<[1], [0], [0], [1], [0, 0, 1, 1], [], []>} : vector<2x32xf32>, vector<32x32xf32>, vector<2x32xf32> -> vector<2x32xf32>
    %182 = arith.addf %180, %181 : vector<2x32xf32>
    %183 = math.tanh %182 : vector<2x32xf32>
    %184 = vector.extract_strided_slice %178 {offsets = [2, 0], sizes = [2, 32], strides = [1, 1]} : vector<16x32xf32> to vector<2x32xf32>
    %cst_129 = arith.constant dense<0.000000e+00> : vector<2x32xf32>
    %185 = tpu.matmul %183, %173, %cst_129 {dimension_numbers = #tpu.dot_dimension_numbers<[1], [0], [0], [1], [0, 0, 1, 1], [], []>} : vector<2x32xf32>, vector<32x32xf32>, vector<2x32xf32> -> vector<2x32xf32>
    %186 = arith.addf %184, %185 : vector<2x32xf32>
    %187 = math.tanh %186 : vector<2x32xf32>
    %188 = vector.extract_strided_slice %178 {offsets = [4, 0], sizes = [2, 32], strides = [1, 1]} : vector<16x32xf32> to vector<2x32xf32>
    %cst_130 = arith.constant dense<0.000000e+00> : vector<2x32xf32>
    %189 = tpu.matmul %187, %173, %cst_130 {dimension_numbers = #tpu.dot_dimension_numbers<[1], [0], [0], [1], [0, 0, 1, 1], [], []>} : vector<2x32xf32>, vector<32x32xf32>, vector<2x32xf32> -> vector<2x32xf32>
    %190 = arith.addf %188, %189 : vector<2x32xf32>
    %191 = math.tanh %190 : vector<2x32xf32>
    %192 = vector.extract_strided_slice %178 {offsets = [6, 0], sizes = [2, 32], strides = [1, 1]} : vector<16x32xf32> to vector<2x32xf32>
    %cst_131 = arith.constant dense<0.000000e+00> : vector<2x32xf32>
    %193 = tpu.matmul %191, %173, %cst_131 {dimension_numbers = #tpu.dot_dimension_numbers<[1], [0], [0], [1], [0, 0, 1, 1], [], []>} : vector<2x32xf32>, vector<32x32xf32>, vector<2x32xf32> -> vector<2x32xf32>
    %194 = arith.addf %192, %193 : vector<2x32xf32>
    %195 = math.tanh %194 : vector<2x32xf32>
    %196 = vector.extract_strided_slice %178 {offsets = [8, 0], sizes = [2, 32], strides = [1, 1]} : vector<16x32xf32> to vector<2x32xf32>
    %cst_132 = arith.constant dense<0.000000e+00> : vector<2x32xf32>
    %197 = tpu.matmul %195, %173, %cst_132 {dimension_numbers = #tpu.dot_dimension_numbers<[1], [0], [0], [1], [0, 0, 1, 1], [], []>} : vector<2x32xf32>, vector<32x32xf32>, vector<2x32xf32> -> vector<2x32xf32>
    %198 = arith.addf %196, %197 : vector<2x32xf32>
    %199 = math.tanh %198 : vector<2x32xf32>
    %200 = vector.extract_strided_slice %178 {offsets = [10, 0], sizes = [2, 32], strides = [1, 1]} : vector<16x32xf32> to vector<2x32xf32>
    %cst_133 = arith.constant dense<0.000000e+00> : vector<2x32xf32>
    %201 = tpu.matmul %199, %173, %cst_133 {dimension_numbers = #tpu.dot_dimension_numbers<[1], [0], [0], [1], [0, 0, 1, 1], [], []>} : vector<2x32xf32>, vector<32x32xf32>, vector<2x32xf32> -> vector<2x32xf32>
    %202 = arith.addf %200, %201 : vector<2x32xf32>
    %203 = math.tanh %202 : vector<2x32xf32>
    %204 = vector.extract_strided_slice %178 {offsets = [12, 0], sizes = [2, 32], strides = [1, 1]} : vector<16x32xf32> to vector<2x32xf32>
    %cst_134 = arith.constant dense<0.000000e+00> : vector<2x32xf32>
    %205 = tpu.matmul %203, %173, %cst_134 {dimension_numbers = #tpu.dot_dimension_numbers<[1], [0], [0], [1], [0, 0, 1, 1], [], []>} : vector<2x32xf32>, vector<32x32xf32>, vector<2x32xf32> -> vector<2x32xf32>
    %206 = arith.addf %204, %205 : vector<2x32xf32>
    %207 = math.tanh %206 : vector<2x32xf32>
    %208 = vector.extract_strided_slice %178 {offsets = [14, 0], sizes = [2, 32], strides = [1, 1]} : vector<16x32xf32> to vector<2x32xf32>
    %cst_135 = arith.constant dense<0.000000e+00> : vector<2x32xf32>
    %209 = tpu.matmul %207, %173, %cst_135 {dimension_numbers = #tpu.dot_dimension_numbers<[1], [0], [0], [1], [0, 0, 1, 1], [], []>} : vector<2x32xf32>, vector<32x32xf32>, vector<2x32xf32> -> vector<2x32xf32>
    %210 = arith.addf %208, %209 : vector<2x32xf32>
    %211 = math.tanh %210 : vector<2x32xf32>
    %c0_136 = arith.constant 0 : index
    %c0_137 = arith.constant 0 : index
    %212 = vector.load %arg13[%c0_136, %c0_137] : memref<32x32xf32, #tpu.memory_space<vmem>>, vector<32x32xf32>
    %cst_138 = arith.constant dense<0.000000e+00> : vector<2x32xf32>
    %213 = tpu.matmul %211, %212, %cst_138 {dimension_numbers = #tpu.dot_dimension_numbers<[1], [0], [0], [1], [0, 0, 1, 1], [], []>} : vector<2x32xf32>, vector<32x32xf32>, vector<2x32xf32> -> vector<2x32xf32>
    %c0_139 = arith.constant 0 : index
    %c0_140 = arith.constant 0 : index
    %214 = vector.load %arg14[%c0_139, %c0_140] : memref<1x32xf32, #tpu.memory_space<vmem>>, vector<1x32xf32>
    %215 = vector.broadcast %214 : vector<1x32xf32> to vector<2x32xf32>
    %216 = arith.addf %213, %215 : vector<2x32xf32>
    %cst_141 = arith.constant 0.000000e+00 : f32
    %217 = vector.broadcast %cst_141 : f32 to vector<2x32xf32>
    %218 = arith.maximumf %216, %217 : vector<2x32xf32>
    %c0_142 = arith.constant 0 : index
    %c0_143 = arith.constant 0 : index
    %219 = vector.load %arg15[%c0_142, %c0_143] : memref<32x10xf32, #tpu.memory_space<vmem>>, vector<32x10xf32>
    %cst_144 = arith.constant dense<0.000000e+00> : vector<2x10xf32>
    %220 = tpu.matmul %218, %219, %cst_144 {dimension_numbers = #tpu.dot_dimension_numbers<[1], [0], [0], [1], [0, 0, 1, 1], [], []>} : vector<2x32xf32>, vector<32x10xf32>, vector<2x10xf32> -> vector<2x10xf32>
    %c0_145 = arith.constant 0 : index
    %c0_146 = arith.constant 0 : index
    %221 = vector.load %arg16[%c0_145, %c0_146] : memref<1x10xf32, #tpu.memory_space<vmem>>, vector<1x10xf32>
    %222 = vector.broadcast %221 : vector<1x10xf32> to vector<2x10xf32>
    %223 = arith.addf %220, %222 : vector<2x10xf32>
    %c0_147 = arith.constant 0 : index
    %c0_148 = arith.constant 0 : index
    %224 = vector.load %arg17[%c0_147, %c0_148] : memref<2x10xf32, #tpu.memory_space<vmem>>, vector<2x10xf32>
    tpu.vector_store %arg17[%c0_147, %c0_148], %223 {strides = array<i32>} : memref<2x10xf32, #tpu.memory_space<vmem>>, vector<2x10xf32>,
    return
  }
}

</mosaic_0001>

<bundles_post_ra>
// kernel: _forward_impl.1
= control target key start
LH: loop header
LB: loop body
LE: loop exit
PB: predicated region body
PF: predicated region fallthrough
CT: control target
= control target key end

     0   :  { %s2440_s0 = inlined_call_operand.vmem [shape: f32[2,8,16], index: 0, kind: input, shape index: {}]   ;;  %s2441_s1 = inlined_call_operand.hbm [shape: f32[16,32], index: 1, kind: input, shape index: {}]   ;;  %s2442_s2 = inlined_call_operand.vmem [shape: f32[32,32], index: 2, kind: input, shape index: {}]   ;;  %s2443_s3 = inlined_call_operand.vmem [shape: f32[1,32], index: 3, kind: input, shape index: {}]   ;;  %s2444_s4 = inlined_call_operand.hbm [shape: f32[32,32], index: 4, kind: input, shape index: {}]   ;;  %s2445_s5 = inlined_call_operand.hbm [shape: f32[32,32], index: 5, kind: input, shape index: {}]   ;;  %s2446_s6 = inlined_call_operand.vmem [shape: f32[1,32], index: 6, kind: input, shape index: {}]   ;;  %s2447_s7 = inlined_call_operand.hbm [shape: f32[32,32], index: 7, kind: input, shape index: {}]   ;;  %s2448_s8 = inlined_call_operand.hbm [shape: f32[32,32], index: 8, kind: input, shape index: {}]   ;;  %s2449_s9 = inlined_call_operand.vmem [shape: f32[1,32], index: 9, kind: input, shape index: {}]   ;;  %s2450_s10 = inlined_call_operand.hbm [shape: f32[32,32], index: 10, kind: input, shape index: {}]   ;;  %s2451_s11 = inlined_call_operand.hbm [shape: f32[32,32], index: 11, kind: input, shape index: {}]   ;;  %s2452_s12 = inlined_call_operand.vmem [shape: f32[1,32], index: 12, kind: input, shape index: {}]   ;;  %s2453_s13 = inlined_call_operand.hbm [shape: f32[32,32], index: 13, kind: input, shape index: {}]   ;;  %s2454_s14 = inlined_call_operand.hbm [shape: f32[1,32], index: 14, kind: input, shape index: {}]   ;;  %s2455_s15 = inlined_call_operand.vmem [shape: f32[32,10], index: 15, kind: input, shape index: {}]   ;;  %s2456_s16 = inlined_call_operand.hbm [shape: f32[1,10], index: 16, kind: input, shape index: {}]   ;;  %s2457_s17 = inlined_call_operand.hbm [shape: f32[2,10], index: 17, kind: output, shape index: {}]  }
   0x1   :  { %2459 = sst [smem:[#allocation28_spill]] %s2440_s0 }
   0x2   :  { %2460 = sst [smem:[#allocation29_spill]] %s2441_s1 }
   0x3   :  { %22 = vsyncpa [#allocation4], 0 }
   0x4   :  { %23 = vsyncpa [#allocation7], 0 }
   0x5   :  { %24 = vsyncpa [#allocation10], 0 }
   0x6   :  { %25 = vsyncpa [#allocation13], 0 }
   0x7   :  { %26 = vsyncpa [#allocation16], 0 }
   0x8   :  { %27 = vsyncpa [#allocation19], 0 }
   0x9   :  { %28 = vsyncpa [#allocation5], 0  ;;  %s52_s26 = sshll.u32 %s2444_s4, 4  ;;  %s1957_s27 = smov [#allocation6]   ;;  %s53_s26 = int_to_ptr.hbm [resolvable:$true] %s52_s26 }
   0xa   :  { %s54_s28 = sshll.u32 %s1957_s27, 4  ;;  %s80_s30 = sshll.u32 %s2447_s7, 4  ;;  %s55_s28 = int_to_ptr.vmem [resolvable:$true] %s54_s28  ;;  %s81_s30 = int_to_ptr.hbm [resolvable:$true] %s80_s30 }
   0xb   :  { %s1958_s18 = smov 128   ;;  %s1959_s19 = smov 8  }
   0xc   :  { %60 = dma.hbm_to_vmem [thread:$0]  %s53_s26, 512, %s55_s28, [#allocation7], %s1958_s18, %s1958_s18, %s1959_s19  }
   0xd   :  { %s1960_s1 = smov [#allocation9]   ;;  %s108_s4 = sshll.u32 %s2450_s10, 4  ;;  %s109_s4 = int_to_ptr.hbm [resolvable:$true] %s108_s4 }
   0xe   :  { %s82_s20 = sshll.u32 %s1960_s1, 4  ;;  %s136_s24 = sshll.u32 %s2453_s13, 4  ;;  %s83_s20 = int_to_ptr.vmem [resolvable:$true] %s82_s20  ;;  %s137_s24 = int_to_ptr.hbm [resolvable:$true] %s136_s24 }
   0xf   :  { %88 = dma.hbm_to_vmem [thread:$0]  %s81_s30, 512, %s83_s20, [#allocation10], %s1958_s18, %s1958_s18, %s1959_s19  }
  0x10   :  { %s1961_s25 = smov [#allocation12]   ;;  %s1962_s26 = smov [#allocation15]  }
  0x11   :  { %s110_s27 = sshll.u32 %s1961_s25, 4  ;;  %s138_s10 = sshll.u32 %s1962_s26, 4  ;;  %s111_s27 = int_to_ptr.vmem [resolvable:$true] %s110_s27  ;;  %s139_s10 = int_to_ptr.vmem [resolvable:$true] %s138_s10 }
  0x12   :  { %116 = dma.hbm_to_vmem [thread:$0]  %s109_s4, 512, %s111_s27, [#allocation13], %s1958_s18, %s1958_s18, %s1959_s19  }
  0x13   :  { %s2461_s0 = sld [smem:[#allocation29_spill]]  ;;  %s65_s20 = sshll.u32 %s2445_s5, 4  ;;  %s66_s20 = int_to_ptr.hbm [resolvable:$true] %s65_s20 }
  0x14   :  { %144 = dma.hbm_to_vmem [thread:$0]  %s137_s24, 512, %s139_s10, [#allocation16], %s1958_s18, %s1958_s18, %s1959_s19  }
  0x15   :  { %s1963_s21 = smov [#allocation3]   ;;  %s1964_s4 = smov [#allocation8]  }
  0x16   :  { %s37_s22 = sshll.u32 %s1963_s21, 4  ;;  %s67_s7 = sshll.u32 %s1964_s4, 4  ;;  %s38_s22 = int_to_ptr.vmem [resolvable:$true] %s37_s22  ;;  %s68_s7 = int_to_ptr.vmem [resolvable:$true] %s67_s7 }
  0x17   :  { %s93_s27 = sshll.u32 %s2448_s8, 4  ;;  %s121_s26 = sshll.u32 %s2451_s11, 4  ;;  %s94_s27 = int_to_ptr.hbm [resolvable:$true] %s93_s27  ;;  %s122_s26 = int_to_ptr.hbm [resolvable:$true] %s121_s26 }
  0x18   :  { %73 = dma.hbm_to_vmem [thread:$0]  %s66_s20, 512, %s68_s7, [#allocation7], %s1958_s18, %s1958_s18, %s1959_s19  }
  0x19   :  { %s35_s1 = sshll.u32 %s2461_s0, 4  ;;  %s1965_s10 = smov [#allocation11]   ;;  %s36_s1 = int_to_ptr.hbm [resolvable:$true] %s35_s1 }
  0x1a   :  { %43 = dma.hbm_to_vmem [thread:$0]  %s36_s1, 256, %s38_s22, [#allocation4], %s1958_s18, %s1958_s18, %s1959_s19  }
  0x1b   :  { %s95_s28 = sshll.u32 %s1965_s10, 4  ;;  %s1966_s29 = smov [#allocation14]   ;;  %s96_s28 = int_to_ptr.vmem [resolvable:$true] %s95_s28 }
  0x1c   :  { %101 = dma.hbm_to_vmem [thread:$0]  %s94_s27, 512, %s96_s28, [#allocation10], %s1958_s18, %s1958_s18, %s1959_s19  }
  0x1d   :  { %s123_s8 = sshll.u32 %s1966_s29, 4  ;;  %s150_s13 = sshll.u32 %s2454_s14, 4  ;;  %s124_s8 = int_to_ptr.vmem [resolvable:$true] %s123_s8  ;;  %s151_s13 = int_to_ptr.hbm [resolvable:$true] %s150_s13 }
  0x1e   :  { %129 = dma.hbm_to_vmem [thread:$0]  %s122_s26, 512, %s124_s8, [#allocation13], %s1958_s18, %s1958_s18, %s1959_s19  }
  0x1f   :  { %s163_s20 = sshll.u32 %s2456_s16, 4  ;;  %s1967_s21 = smov [#allocation17]   ;;  %s164_s20 = int_to_ptr.hbm [resolvable:$true] %s163_s20 }
  0x20   :  { %s152_s22 = sshll.u32 %s1967_s21, 4  ;;  %s1968_s4 = smov [#allocation18]   ;;  %s153_s22 = int_to_ptr.vmem [resolvable:$true] %s152_s22 }
  0x21   :  { %155 = dma.hbm_to_vmem [thread:$0]  %s151_s13, 16, %s153_s22, [#allocation16]  }
  0x22   :  { %s165_s7 = sshll.u32 %s1968_s4, 4  ;;  %s166_s7 = int_to_ptr.vmem [resolvable:$true] %s165_s7 }
  0x23   :  { %168 = dma.hbm_to_vmem [thread:$0]  %s164_s20, 16, %s166_s7, [#allocation19]  }
  0x24   :  { %1943 = dma.done.wait [#allocation4], 256  }
  0x25   :  { %1944 = vsyncadd [#allocation4], 4294967040 }
  0x26   :  { %1945 = dma.done.wait [#allocation7], 1024  }
  0x27   :  { %1946 = vsyncadd [#allocation7], 4294966272 }
  0x28   :  { %1947 = dma.done.wait [#allocation10], 1024  }
  0x29   :  { %1948 = vsyncadd [#allocation10], 4294966272 }
  0x2a   :  { %1949 = dma.done.wait [#allocation13], 1024  }
  0x2b   :  { %1950 = vsyncadd [#allocation13], 4294966272 }
  0x2c   :  { %1951 = dma.done.wait [#allocation16], 528  }
  0x2d   :  { %1952 = vsyncadd [#allocation16], 4294966768 }
  0x2e   :  { %1953 = dma.done.wait [#allocation19], 16  }
  0x2f   :  { %1954 = vsyncadd [#allocation19], 4294967280  ;;  %v2118_v0 = vld [vmem:[%s2442_s2 + $0x18] sm:$0xff]  ;;  %v2125_v2 = vld [vmem:[%s2442_s2 + $0x10] sm:$0xff]  ;;  %vm224_vm0 = vcmask 1041409   ;;  %s2462_s24 = sld [smem:[#allocation28_spill]] }
  0x30   :  { %v2120_v1 = vld [vmem:[#allocation3 + $0x8] sm:$0xff]  ;;  %265 = vmatpush.msra.mxu1 %v2118_v0  ;;  %v2129_v3 = vld [vmem:[#allocation3] sm:$0xff]  ;;  %v2134_v4 = vld [vmem:[%s2442_s2 + $0x8] sm:$0xff]  ;;  %320 = vmatpush.msra.mxu3 %v2118_v0  ;;  %vm226_vm1 = vcmask 130048   ;;  %v1969_v10 = vmov 0.0   ;;  %vm275_vm2 = vcmask 254976  }
  0x31   :  { %243 = vmatpush.msra.mxu0 %v2120_v1  ;;  %299 = vmatpush.msra.mxu2 %v2120_v1  ;;  %v2149_v8 = vld [vmem:[%s2442_s2] sm:$0xff]  ;;  %vm249_vm3 = vcmask 261120   ;;  %v658_v47 = vld [vmem:[#allocation6 + $0x18] sm:$0xff]  ;;  %v657_v48 = vld [vmem:[#allocation6 + $0x10] sm:$0xff]  ;;  %vm749_vm4 = vcmask 257026   ;;  %vm780_vm5 = vcmask 259076  }
  0x32   :  { %266 = vmatpush.msra.mxu1 %v2125_v2  ;;  %321 = vmatpush.msra.mxu3 %v2125_v2  ;;  %v2191_v15 = vld [vmem:[%s2443_s3] ss:$0 sm:$0xff]  ;;  %v656_v49 = vld [vmem:[#allocation6 + $0x8] sm:$0xff]  ;;  %vm811_vm6 = vcmask 261126   ;;  %s1970_s18 = smov [#allocation20]   ;;  %s1536_s27 = sshll.u32 %s2457_s17, 4  ;;  %s1537_s27 = int_to_ptr.hbm [resolvable:$true] %s1536_s27 }
  0x33   :  { %244 = vmatpush.msra.mxu0 %v2129_v3  ;;  %300 = vmatpush.msra.mxu2 %v2129_v3  ;;  %v655_v50 = vld [vmem:[#allocation6] sm:$0xff]  ;;  %s1534_s19 = sshll.u32 %s1970_s18, 4  ;;  %vm1527_vm7 = vcmask 74752   ;;  %s1535_s19 = int_to_ptr.vmem [resolvable:$true] %s1534_s19 }
  0x34   :  { %267 = vmatpush.msra.mxu1 %v2134_v4  ;;  %322 = vmatpush.msra.mxu3 %v2134_v4 }
  0x35   :  { %v216_v5 = vld [vmem:[%s2462_s24] sm:$0x1]  ;;  %v217_v6 = vld [vmem:[%s2462_s24 + $0x8] sm:$0x1]  ;;  %374 = vmatpush.msrb.mxu2 %v2118_v0  ;;  %353 = vmatpush.msrb.mxu0 %v2120_v1  ;;  %v278_v11 = vld [vmem:[%s2462_s24 + $0x9] sm:$0x1] }
  0x36   :  { %v223_v7 = vrot.slane %v217_v6, 7  ;;  %268 = vmatpush.msra.mxu1 %v2149_v8  ;;  %323 = vmatpush.msra.mxu3 %v2149_v8  ;;  %v281_v12 = vrot.slane %v278_v11, 7  ;;  %v277_v13 = vld [vmem:[%s2462_s24 + $0x1] sm:$0x1]  ;;  %v331_v21 = vld [vmem:[%s2462_s24 + $0x2] sm:$0x1] }
  0x37   :  { %375 = vmatpush.msrb.mxu2 %v2125_v2  ;;  %269 = vmatmul.f32.vlgmr.msra.gmra.mxu1 %v1969_v10  ;;  %v332_v22 = vld [vmem:[%s2462_s24 + $0xa] sm:$0x1]  ;;  %v385_v30 = vld [vmem:[%s2462_s24 + $0x3] sm:$0x1]  ;;  %v386_v31 = vld [vmem:[%s2462_s24 + $0xb] sm:$0x1] }
  0x38   :  { %v225_v9 = vsel %vm224_vm0, %v223_v7, %v216_v5  ;;  %428 = vmatpush.msrb.mxu3 %v2118_v0  ;;  %407 = vmatpush.msrb.mxu1 %v2120_v1  ;;  %v282_v14 = vsel %vm224_vm0, %v281_v12, %v277_v13  ;;  %v335_v23 = vrot.slane %v332_v22, 7  ;;  %v389_v32 = vrot.slane %v386_v31, 7  ;;  %v440_v39 = vld [vmem:[%s2462_s24 + $0xc] sm:$0x1]  ;;  %v439_v41 = vld [vmem:[%s2462_s24 + $0x4] sm:$0x1] }
  0x39   :  { %1551 = vmatmul.msk.f32.vlgmr.msra.gmra.mxu0 %vm226_vm1, %v225_v9  ;;  %376 = vmatpush.msrb.mxu2 %v2134_v4  ;;  %v443_v40 = vrot.slane %v440_v39, 7  ;;  %v548_v43 = vld [vmem:[%s2462_s24 + $0xe] sm:$0x1]  ;;  %v547_v45 = vld [vmem:[%s2462_s24 + $0x6] sm:$0x1] }
  0x3a   :  { %354 = vmatpush.msrb.mxu0 %v2129_v3  ;;  %429 = vmatpush.msrb.mxu3 %v2125_v2  ;;  %v336_v24 = vsel %vm224_vm0, %v335_v23, %v331_v21  ;;  %v390_v33 = vsel %vm224_vm0, %v389_v32, %v385_v30  ;;  %v551_v44 = vrot.slane %v548_v43, 7  ;;  %v493_v57 = vld [vmem:[%s2462_s24 + $0x5] sm:$0x1]  ;;  %v494_v58 = vld [vmem:[%s2462_s24 + $0xd] sm:$0x1]  ;;  %v932_v43 = vld [vmem:[#allocation9 + $0x18] sm:$0xff] }
  0x3b   :  { %377 = vmatpush.msrb.mxu2 %v2149_v8  ;;  %408 = vmatpush.msrb.mxu1 %v2129_v3  ;;  %v444_v42 = vsel %vm224_vm0, %v443_v40, %v439_v41  ;;  %v497_v59 = vrot.slane %v494_v58, 7  ;;  %v659_v5 = vld [vmem:[#allocation8] sm:$0xff]  ;;  %v602_v12 = vld [vmem:[%s2462_s24 + $0xf] sm:$0x1] }
  0x3c   :  { %461 = vmatpush.msra.mxu0 %v2120_v1  ;;  %430 = vmatpush.msrb.mxu3 %v2134_v4  ;;  %v552_v46 = vsel %vm224_vm0, %v551_v44, %v547_v45  ;;  %v605_v13 = vrot.slane %v602_v12, 7  ;;  %v2281_v21 = vld [vmem:[%s2446_s6] ss:$0 sm:$0xff]  ;;  %v931_v44 = vld [vmem:[#allocation9 + $0x10] sm:$0xff]  ;;  %v930_v45 = vld [vmem:[#allocation9 + $0x8] sm:$0xff] }
  0x3d   :  { %515 = vmatpush.msra.mxu1 %v2120_v1  ;;  %1552 = vmatmul.msk.f32.vlgmr.msra.gmra.mxu2 %vm226_vm1, %v282_v14  ;;  %v498_v60 = vsel %vm224_vm0, %v497_v59, %v493_v57  ;;  %v601_v14 = vld [vmem:[%s2462_s24 + $0x7] sm:$0x1] }
  0x3e   :  { %462 = vmatpush.msra.mxu0 %v2129_v3  ;;  %431 = vmatpush.msrb.mxu3 %v2149_v8 }
  0x3f   :  { %516 = vmatpush.msra.mxu1 %v2129_v3  ;;  %482 = vmatpush.msra.mxu2 %v2118_v0 }
  0x40   :  { %1556 = vmatmul.msk.f32.vlgmr.msrb.gmra.mxu1 %vm226_vm1, %v390_v33 }
  0x41   :  { %483 = vmatpush.msra.mxu2 %v2125_v2  ;;  %1554 = vmatmul.msk.f32.vlgmr.msrb.gmra.mxu0 %vm226_vm1, %v336_v24 }
  0x42   :  { %569 = vmatpush.msrb.mxu0 %v2120_v1  ;;  %623 = vmatpush.msrb.mxu1 %v2120_v1 }
  0x43   :  { %484 = vmatpush.msra.mxu2 %v2134_v4 }
  0x44   :  { %570 = vmatpush.msrb.mxu0 %v2129_v3  ;;  %624 = vmatpush.msrb.mxu1 %v2129_v3  ;;  %v661_v3 = vld [vmem:[#allocation8 + $0x10] sm:$0xff] }
  0x45   :  { %485 = vmatpush.msra.mxu2 %v2149_v8 }
  0x48   :  { %1560 = vmatmul.msk.f32.vlgmr.msra.gmra.mxu1 %vm226_vm1, %v498_v60 }
  0x49   :  { %1558 = vmatmul.msk.f32.vlgmr.msra.gmra.mxu0 %vm226_vm1, %v444_v42 }
  0x4a   :  { %687 = vmatpush.msra.mxu0 %v658_v47 }
  0x4c   :  { %688 = vmatpush.msra.mxu0 %v657_v48 }
  0x4e   :  { %689 = vmatpush.msra.mxu0 %v656_v49 }
  0x50   :  { %690 = vmatpush.msra.mxu0 %v655_v50 }
  0x51   :  { %1562 = vmatmul.msk.f32.vlgmr.msrb.gmra.mxu0 %vm226_vm1, %v552_v46  ;;  %v929_v46 = vld [vmem:[#allocation9] sm:$0xff] }
  0xb4   :  { %v270_v18 = vpop.f32.mrf.mxu1 }
  0xb6   :  { %v246_v16 = vpop.f32.mrf.mxu0 }
  0xb7   :  { %v247_v17 = vadd.f32 %v2191_v15, %v246_v16  ;;  %v606_v16 = vsel %vm224_vm0, %v605_v13, %v601_v14 }
  0xb8   :  { %1564 = vmatmul.msk.f32.vlgmr.msrb.gmra.mxu1 %vm226_vm1, %v606_v16 }
  0xb9   :  { %v273_v19 = vadd.f32 %v270_v18, %v247_v17 }
  0xbb   :  { %1615 = vtanh.f32 %v273_v19 }
  0xbd   :  { %v410_v51 = vpop.f32.mrf.mxu1 }
  0xbe   :  { %v356_v34 = vpop.f32.mrf.mxu0  ;;  %v411_v52 = vadd.f32 %v2191_v15, %v410_v51 }
  0xbf   :  { %v357_v35 = vadd.f32 %v2191_v15, %v356_v34 }
  0xc0   :  { %v302_v25 = vpop.f32.mrf.mxu2 }
  0xc1   :  { %v1616_v20 = vpop.eup %1615  ;;  %v303_v26 = vadd.f32 %v2191_v15, %v302_v25 }
  0xc2   :  { %276 = vst.msk [vmem:[#allocation2] sm:$0x3] %vm275_vm2, %v1616_v20  ;;  %1553 = vmatmul.msk.f32.vlgmr.msra.gmra.mxu3 %vm249_vm3, %v1616_v20 }
  0xc3   :  { %536 = vmatpush.msra.mxu3 %v2118_v0 }
  0xc5   :  { %537 = vmatpush.msra.mxu3 %v2125_v2  ;;  %v518_v6 = vpop.f32.mrf.mxu1 }
  0xc6   :  { %v464_v61 = vpop.f32.mrf.mxu0  ;;  %v519_v7 = vadd.f32 %v2191_v15, %v518_v6 }
  0xc7   :  { %538 = vmatpush.msra.mxu3 %v2134_v4  ;;  %v465_v62 = vadd.f32 %v2191_v15, %v464_v61 }
  0xc9   :  { %539 = vmatpush.msra.mxu3 %v2149_v8 }
  0xce   :  { %v572_v17 = vpop.f32.mrf.mxu0 }
  0xcf   :  { %v573_v18 = vadd.f32 %v2191_v15, %v572_v17 }
 0x145   :  { %v325_v27 = vpop.f32.mrf.mxu3 }
 0x146   :  { %v328_v28 = vadd.f32 %v325_v27, %v303_v26 }
 0x148   :  { %1617 = vtanh.f32 %v328_v28  ;;  %v626_v28 = vpop.f32.mrf.mxu1 }
 0x14e   :  { %v1618_v29 = vpop.eup %1617 }
 0x14f   :  { %330 = vst.msk [vmem:[#allocation2 + $0x2] sm:$0x3] %vm275_vm2, %v1618_v29  ;;  %1555 = vmatmul.msk.f32.vlgmr.msrb.gmra.mxu2 %vm249_vm3, %v1618_v29  ;;  %v627_v29 = vadd.f32 %v2191_v15, %v626_v28 }
 0x150   :  { %590 = vmatpush.msrb.mxu2 %v2118_v0 }
 0x152   :  { %591 = vmatpush.msrb.mxu2 %v2125_v2 }
 0x154   :  { %592 = vmatpush.msrb.mxu2 %v2134_v4 }
 0x156   :  { %593 = vmatpush.msrb.mxu2 %v2149_v8 }
 0x1d2   :  { %v379_v36 = vpop.f32.mrf.mxu2 }
 0x1d3   :  { %v382_v37 = vadd.f32 %v379_v36, %v357_v35 }
 0x1d5   :  { %1619 = vtanh.f32 %v382_v37 }
 0x1db   :  { %v1620_v38 = vpop.eup %1619 }
 0x1dc   :  { %384 = vst.msk [vmem:[#allocation2 + $0x4] sm:$0x3] %vm275_vm2, %v1620_v38  ;;  %1557 = vmatmul.msk.f32.vlgmr.msrb.gmra.mxu3 %vm249_vm3, %v1620_v38 }
 0x1dd   :  { %644 = vmatpush.msrb.mxu3 %v2118_v0 }
 0x1df   :  { %645 = vmatpush.msrb.mxu3 %v2125_v2  ;;  %v662_v2 = vld [vmem:[#allocation8 + $0x18] sm:$0xff] }
 0x1e0   :  { %736 = vmatpush.msra.mxu1 %v662_v2  ;;  %885 = vmatpush.msrb.mxu0 %v662_v2 }
 0x1e1   :  { %646 = vmatpush.msrb.mxu3 %v2134_v4  ;;  %v660_v4 = vld [vmem:[#allocation8 + $0x8] sm:$0xff] }
 0x1e2   :  { %737 = vmatpush.msra.mxu1 %v661_v3  ;;  %886 = vmatpush.msrb.mxu0 %v661_v3 }
 0x1e3   :  { %647 = vmatpush.msrb.mxu3 %v2149_v8 }
 0x1e4   :  { %738 = vmatpush.msra.mxu1 %v660_v4  ;;  %887 = vmatpush.msrb.mxu0 %v660_v4 }
 0x1e6   :  { %739 = vmatpush.msra.mxu1 %v659_v5  ;;  %888 = vmatpush.msrb.mxu0 %v659_v5 }
 0x1e8   :  { %829 = vmatpush.msrb.mxu1 %v662_v2 }
 0x1ea   :  { %830 = vmatpush.msrb.mxu1 %v661_v3 }
 0x1ec   :  { %831 = vmatpush.msrb.mxu1 %v660_v4 }
 0x1ee   :  { %832 = vmatpush.msrb.mxu1 %v659_v5 }
 0x25f   :  { %v433_v53 = vpop.f32.mrf.mxu3 }
 0x260   :  { %v436_v54 = vadd.f32 %v433_v53, %v411_v52  ;;  %v2298_v53 = vld [vmem:[#allocation11 + $0x18] sm:$0xff] }
 0x262   :  { %1621 = vtanh.f32 %v436_v54  ;;  %v2300_v54 = vld [vmem:[#allocation11 + $0x10] sm:$0xff] }
 0x268   :  { %v1622_v55 = vpop.eup %1621 }
 0x269   :  { %438 = vst.msk [vmem:[#allocation2 + $0x6] sm:$0x3] %vm275_vm2, %v1622_v55  ;;  %1559 = vmatmul.msk.f32.vlgmr.msra.gmra.mxu2 %vm249_vm3, %v1622_v55  ;;  %v2304_v55 = vld [vmem:[#allocation11 + $0x8] sm:$0xff] }
 0x26a   :  { %710 = vmatpush.msra.mxu2 %v662_v2 }
 0x26c   :  { %711 = vmatpush.msra.mxu2 %v661_v3 }
 0x26e   :  { %712 = vmatpush.msra.mxu2 %v660_v4 }
 0x270   :  { %v664_v56 = vld [vmem:[#allocation2] sm:$0xff]  ;;  %713 = vmatpush.msra.mxu2 %v659_v5 }
 0x271   :  { %1566 = vmatmul.msk.f32.vlgmr.msra.gmra.mxu0 %vm249_vm3, %v664_v56  ;;  %v2310_v56 = vld [vmem:[#allocation11] sm:$0xff] }
 0x272   :  { %1010 = vmatpush.msra.mxu0 %v2298_v53 }
 0x274   :  { %1011 = vmatpush.msra.mxu0 %v2300_v54 }
 0x276   :  { %1012 = vmatpush.msra.mxu0 %v2304_v55 }
 0x278   :  { %1013 = vmatpush.msra.mxu0 %v2310_v56 }
 0x2ec   :  { %v487_v63 = vpop.f32.mrf.mxu2 }
 0x2ed   :  { %v490_v0 = vadd.f32 %v487_v63, %v465_v62 }
 0x2ee   :  { %v692_v22 = vpop.f32.mrf.mxu0 }
 0x2ef   :  { %1623 = vtanh.f32 %v490_v0  ;;  %v693_v23 = vadd.f32 %v2281_v21, %v692_v22  ;;  %v2337_v0 = vld [vmem:[%s2449_s9] ss:$0 sm:$0xff] }
 0x2f5   :  { %v1624_v1 = vpop.eup %1623 }
 0x2f6   :  { %492 = vst.msk [vmem:[#allocation2 + $0x8] sm:$0x3] %vm275_vm2, %v1624_v1  ;;  %1561 = vmatmul.msk.f32.vlgmr.msra.gmra.mxu3 %vm249_vm3, %v1624_v1 }
 0x2f7   :  { %767 = vmatpush.msra.mxu3 %v662_v2 }
 0x2f9   :  { %768 = vmatpush.msra.mxu3 %v661_v3 }
 0x2fb   :  { %769 = vmatpush.msra.mxu3 %v660_v4 }
 0x2fd   :  { %770 = vmatpush.msra.mxu3 %v659_v5 }
 0x379   :  { %v541_v8 = vpop.f32.mrf.mxu3 }
 0x37a   :  { %v544_v9 = vadd.f32 %v541_v8, %v519_v7 }
 0x37c   :  { %1625 = vtanh.f32 %v544_v9 }
 0x382   :  { %v1626_v11 = vpop.eup %1625 }
 0x383   :  { %546 = vst.msk [vmem:[#allocation2 + $0xa] sm:$0x3] %vm275_vm2, %v1626_v11  ;;  %1563 = vmatmul.msk.f32.vlgmr.msrb.gmra.mxu2 %vm249_vm3, %v1626_v11 }
 0x384   :  { %798 = vmatpush.msrb.mxu2 %v662_v2 }
 0x386   :  { %799 = vmatpush.msrb.mxu2 %v661_v3 }
 0x388   :  { %800 = vmatpush.msrb.mxu2 %v660_v4 }
 0x38a   :  { %801 = vmatpush.msrb.mxu2 %v659_v5 }
 0x38b   :  { %714 = vmatmul.f32.vlgmr.msra.gmra.mxu2 %v1969_v10 }
 0x38c   :  { %915 = vmatpush.msra.mxu2 %v662_v2 }
 0x38e   :  { %916 = vmatpush.msra.mxu2 %v661_v3 }
 0x390   :  { %917 = vmatpush.msra.mxu2 %v660_v4 }
 0x392   :  { %918 = vmatpush.msra.mxu2 %v659_v5 }
 0x406   :  { %v595_v19 = vpop.f32.mrf.mxu2 }
 0x407   :  { %v598_v20 = vadd.f32 %v595_v19, %v573_v18 }
 0x409   :  { %1627 = vtanh.f32 %v598_v20 }
 0x40e   :  { %v715_v24 = vpop.f32.mrf.mxu2 }
 0x40f   :  { %v1628_v25 = vpop.eup %1627  ;;  %v718_v26 = vadd.f32 %v715_v24, %v693_v23 }
 0x410   :  { %600 = vst.msk [vmem:[#allocation2 + $0xc] sm:$0x3] %vm275_vm2, %v1628_v25  ;;  %1565 = vmatmul.msk.f32.vlgmr.msrb.gmra.mxu3 %vm249_vm3, %v1628_v25 }
 0x411   :  { %1629 = vtanh.f32 %v718_v26  ;;  %855 = vmatpush.msrb.mxu3 %v662_v2 }
 0x413   :  { %856 = vmatpush.msrb.mxu3 %v661_v3 }
 0x415   :  { %857 = vmatpush.msrb.mxu3 %v660_v4 }
 0x417   :  { %v1630_v27 = vpop.eup %1629  ;;  %858 = vmatpush.msrb.mxu3 %v659_v5 }
 0x418   :  { %720 = vst.msk [vmem:[#allocation2] sm:$0x3] %vm275_vm2, %v1630_v27  ;;  %1568 = vmatmul.msk.f32.vlgmr.msra.gmra.mxu1 %vm249_vm3, %v1630_v27 }
 0x419   :  { %961 = vmatpush.msra.mxu1 %v932_v43  ;;  %v2375_v43 = vld [vmem:[#allocation14] sm:$0xff] }
 0x41b   :  { %962 = vmatpush.msra.mxu1 %v931_v44 }
 0x41d   :  { %963 = vmatpush.msra.mxu1 %v930_v45 }
 0x41f   :  { %964 = vmatpush.msra.mxu1 %v929_v46 }
 0x493   :  { %v649_v30 = vpop.f32.mrf.mxu3 }
 0x494   :  { %v652_v31 = vadd.f32 %v649_v30, %v627_v29 }
 0x495   :  { %v741_v32 = vpop.f32.mrf.mxu1 }
 0x496   :  { %1631 = vtanh.f32 %v652_v31  ;;  %v745_v33 = vrot.slane %v741_v32, 6  ;;  %v1203_v31 = vld [vmem:[#allocation12 + $0x18] sm:$0xff]  ;;  %v1202_v32 = vld [vmem:[#allocation12 + $0x10] sm:$0xff] }
 0x498   :  { %v747_v34 = vadd.f32 %v745_v33, %v693_v23  ;;  %v1201_v33 = vld [vmem:[#allocation12 + $0x8] sm:$0xff] }
 0x49a   :  { %1633 = vtanh.f32 %v747_v34  ;;  %v1200_v34 = vld [vmem:[#allocation12] sm:$0xff] }
 0x49c   :  { %v1632_v35 = vpop.eup %1631 }
 0x49d   :  { %654 = vst.msk [vmem:[#allocation2 + $0xe] sm:$0x3] %vm275_vm2, %v1632_v35 }
 0x4a0   :  { %v1634_v36 = vpop.eup %1633 }
 0x4a1   :  { %v752_v37 = vrot.slane %v1634_v36, 2  ;;  %750 = vst.msk [vmem:[#allocation2] sm:$0xc] %vm749_vm4, %v1634_v36 }
 0x4a3   :  { %1569 = vmatmul.msk.f32.vlgmr.msra.gmra.mxu3 %vm249_vm3, %v752_v37 }
 0x4a4   :  { %v665_v38 = vld [vmem:[#allocation2 + $0x8] sm:$0xff]  ;;  %984 = vmatpush.msra.mxu3 %v2298_v53 }
 0x4a5   :  { %1567 = vmatmul.msk.f32.gmra.mxu0 %vm249_vm3, %v665_v38 }
 0x4a6   :  { %985 = vmatpush.msra.mxu3 %v2300_v54 }
 0x4a8   :  { %986 = vmatpush.msra.mxu3 %v2304_v55 }
 0x4aa   :  { %987 = vmatpush.msra.mxu3 %v2310_v56 }
 0x522   :  { %v695_v57 = vpop.f32.mrf.mxu0 }
 0x523   :  { %v696_v58 = vadd.f32 %v2281_v21, %v695_v57 }
 0x526   :  { %v772_v15 = vpop.f32.mrf.mxu3 }
 0x527   :  { %v776_v39 = vrot.slane %v772_v15, 4 }
 0x529   :  { %v778_v40 = vadd.f32 %v776_v39, %v693_v23 }
 0x52b   :  { %1635 = vtanh.f32 %v778_v40  ;;  %v2363_v40 = vld [vmem:[#allocation14 + $0x18] sm:$0xff] }
 0x531   :  { %v1636_v41 = vpop.eup %1635 }
 0x532   :  { %v783_v42 = vrot.slane %v1636_v41, 4  ;;  %781 = vst.msk [vmem:[#allocation2] sm:$0x30] %vm780_vm5, %v1636_v41  ;;  %v2365_v41 = vld [vmem:[#allocation14 + $0x10] sm:$0xff] }
 0x534   :  { %1570 = vmatmul.msk.f32.vlgmr.msrb.gmra.mxu2 %vm249_vm3, %v783_v42  ;;  %v2369_v42 = vld [vmem:[#allocation14 + $0x8] sm:$0xff] }
 0x535   :  { %1040 = vmatpush.msrb.mxu2 %v2298_v53 }
 0x537   :  { %1041 = vmatpush.msrb.mxu2 %v2300_v54 }
 0x539   :  { %1042 = vmatpush.msrb.mxu2 %v2304_v55 }
 0x53b   :  { %1043 = vmatpush.msrb.mxu2 %v2310_v56 }
 0x5b7   :  { %v803_v47 = vpop.f32.mrf.mxu2 }
 0x5b8   :  { %v807_v48 = vrot.slane %v803_v47, 2 }
 0x5ba   :  { %v809_v49 = vadd.f32 %v807_v48, %v693_v23 }
 0x5bc   :  { %1637 = vtanh.f32 %v809_v49 }
 0x5c2   :  { %v1638_v50 = vpop.eup %1637 }
 0x5c3   :  { %v814_v51 = vrot.slane %v1638_v50, 6  ;;  %812 = vst.msk [vmem:[#allocation2] sm:$0xc0] %vm811_vm6, %v1638_v50 }
 0x5c5   :  { %1571 = vmatmul.msk.f32.vlgmr.msrb.gmra.mxu1 %vm249_vm3, %v814_v51 }
 0x5c6   :  { %1156 = vmatpush.msrb.mxu1 %v2298_v53 }
 0x5c8   :  { %1157 = vmatpush.msrb.mxu1 %v2300_v54 }
 0x5ca   :  { %v938_v52 = vld [vmem:[#allocation2] sm:$0xff]  ;;  %1158 = vmatpush.msrb.mxu1 %v2304_v55 }
 0x5cc   :  { %1159 = vmatpush.msrb.mxu1 %v2310_v56 }
 0x5cd   :  { %1575 = vmatmul.msk.f32.vlgmr.msra.gmra.mxu1 %vm249_vm3, %v938_v52  ;;  %v1612_v52 = vld [vmem:[%s2452_s12] ss:$0 sm:$0xff] }
 0x5ce   :  { %1280 = vmatpush.msra.mxu1 %v2363_v40 }
 0x5d0   :  { %1281 = vmatpush.msra.mxu1 %v2365_v41 }
 0x5d2   :  { %1282 = vmatpush.msra.mxu1 %v2369_v42 }
 0x5d4   :  { %1283 = vmatpush.msra.mxu1 %v2375_v43 }
 0x642   :  { %v834_v59 = vpop.f32.mrf.mxu1 }
 0x643   :  { %v837_v60 = vadd.f32 %v834_v59, %v696_v58 }
 0x645   :  { %1639 = vtanh.f32 %v837_v60 }
 0x64a   :  { %v966_v2 = vpop.f32.mrf.mxu1 }
 0x64b   :  { %v1640_v61 = vpop.eup %1639  ;;  %v967_v3 = vadd.f32 %v2337_v0, %v966_v2 }
 0x64c   :  { %839 = vst.msk [vmem:[#allocation2 + $0x8] sm:$0x3] %vm275_vm2, %v1640_v61  ;;  %1572 = vmatmul.msk.f32.vlgmr.msrb.gmra.mxu3 %vm249_vm3, %v1640_v61 }
 0x64d   :  { %1070 = vmatpush.msrb.mxu3 %v2298_v53 }
 0x64f   :  { %1071 = vmatpush.msrb.mxu3 %v2300_v54 }
 0x651   :  { %1072 = vmatpush.msrb.mxu3 %v2304_v55 }
 0x653   :  { %1073 = vmatpush.msrb.mxu3 %v2310_v56 }
 0x654   :  { %988 = vmatmul.f32.vlgmr.msra.gmra.mxu3 %v1969_v10 }
 0x655   :  { %1186 = vmatpush.msra.mxu3 %v2298_v53 }
 0x657   :  { %1187 = vmatpush.msra.mxu3 %v2300_v54 }
 0x659   :  { %1188 = vmatpush.msra.mxu3 %v2304_v55 }
 0x65b   :  { %1189 = vmatpush.msra.mxu3 %v2310_v56 }
 0x6cf   :  { %v860_v62 = vpop.f32.mrf.mxu3 }
 0x6d0   :  { %v864_v63 = vrot.slane %v860_v62, 6 }
 0x6d2   :  { %v866_v1 = vadd.f32 %v864_v63, %v696_v58 }
 0x6d4   :  { %1641 = vtanh.f32 %v866_v1 }
 0x6d7   :  { %v989_v4 = vpop.f32.mrf.mxu3 }
 0x6d8   :  { %v992_v5 = vadd.f32 %v989_v4, %v967_v3 }
 0x6da   :  { %v1642_v6 = vpop.eup %1641  ;;  %1643 = vtanh.f32 %v992_v5 }
 0x6db   :  { %v870_v7 = vrot.slane %v1642_v6, 2  ;;  %868 = vst.msk [vmem:[#allocation2 + $0x8] sm:$0xc] %vm749_vm4, %v1642_v6 }
 0x6dd   :  { %1573 = vmatmul.msk.f32.vlgmr.msrb.gmra.mxu0 %vm249_vm3, %v870_v7 }
 0x6de   :  { %1100 = vmatpush.msrb.mxu0 %v2298_v53 }
 0x6e0   :  { %v1644_v8 = vpop.eup %1643  ;;  %1101 = vmatpush.msrb.mxu0 %v2300_v54 }
 0x6e1   :  { %994 = vst.msk [vmem:[#allocation2] sm:$0x3] %vm275_vm2, %v1644_v8 }
 0x6e2   :  { %1102 = vmatpush.msrb.mxu0 %v2304_v55 }
 0x6e4   :  { %1103 = vmatpush.msrb.mxu0 %v2310_v56 }
 0x6e5   :  { %1577 = vmatmul.msk.f32.vlgmr.msra.gmra.mxu0 %vm249_vm3, %v1644_v8 }
 0x6e6   :  { %1232 = vmatpush.msra.mxu0 %v1203_v31 }
 0x6e8   :  { %1233 = vmatpush.msra.mxu0 %v1202_v32 }
 0x6ea   :  { %1234 = vmatpush.msra.mxu0 %v1201_v33 }
 0x6ec   :  { %1235 = vmatpush.msra.mxu0 %v1200_v34 }
 0x75a   :  { %v890_v9 = vpop.f32.mrf.mxu0 }
 0x75b   :  { %v894_v11 = vrot.slane %v890_v9, 4 }
 0x75d   :  { %v896_v12 = vadd.f32 %v894_v11, %v696_v58 }
 0x75f   :  { %1645 = vtanh.f32 %v896_v12 }
 0x762   :  { %v1015_v13 = vpop.f32.mrf.mxu0 }
 0x763   :  { %v1019_v14 = vrot.slane %v1015_v13, 6 }
 0x765   :  { %v1646_v16 = vpop.eup %1645  ;;  %v1021_v17 = vadd.f32 %v1019_v14, %v967_v3 }
 0x766   :  { %v900_v18 = vrot.slane %v1646_v16, 4  ;;  %898 = vst.msk [vmem:[#allocation2 + $0x8] sm:$0x30] %vm780_vm5, %v1646_v16 }
 0x767   :  { %1647 = vtanh.f32 %v1021_v17 }
 0x768   :  { %1574 = vmatmul.msk.f32.vlgmr.msra.gmra.mxu2 %vm249_vm3, %v900_v18 }
 0x769   :  { %1126 = vmatpush.msra.mxu2 %v2298_v53 }
 0x76b   :  { %1127 = vmatpush.msra.mxu2 %v2300_v54 }
 0x76d   :  { %v1648_v19 = vpop.eup %1647  ;;  %1128 = vmatpush.msra.mxu2 %v2304_v55 }
 0x76e   :  { %v1025_v20 = vrot.slane %v1648_v19, 2  ;;  %1023 = vst.msk [vmem:[#allocation2] sm:$0xc] %vm749_vm4, %v1648_v19 }
 0x76f   :  { %1129 = vmatpush.msra.mxu2 %v2310_v56 }
 0x770   :  { %1578 = vmatmul.msk.f32.vlgmr.msrb.gmra.mxu2 %vm249_vm3, %v1025_v20 }
 0x771   :  { %1255 = vmatpush.msrb.mxu2 %v2363_v40 }
 0x773   :  { %1256 = vmatpush.msrb.mxu2 %v2365_v41 }
 0x775   :  { %1257 = vmatpush.msrb.mxu2 %v2369_v42 }
 0x777   :  { %1258 = vmatpush.msrb.mxu2 %v2375_v43 }
 0x7eb   :  { %v920_v21 = vpop.f32.mrf.mxu2 }
 0x7ec   :  { %v924_v22 = vrot.slane %v920_v21, 2 }
 0x7ee   :  { %v926_v23 = vadd.f32 %v924_v22, %v696_v58 }
 0x7f0   :  { %1649 = vtanh.f32 %v926_v23 }
 0x7f3   :  { %v1045_v24 = vpop.f32.mrf.mxu2 }
 0x7f4   :  { %v1049_v25 = vrot.slane %v1045_v24, 4 }
 0x7f6   :  { %v1650_v26 = vpop.eup %1649  ;;  %v1051_v27 = vadd.f32 %v1049_v25, %v967_v3 }
 0x7f7   :  { %928 = vst.msk [vmem:[#allocation2 + $0x8] sm:$0xc0] %vm811_vm6, %v1650_v26 }
 0x7f8   :  { %1651 = vtanh.f32 %v1051_v27 }
 0x7fe   :  { %v1652_v28 = vpop.eup %1651  ;;  %v939_v29 = vld [vmem:[#allocation2 + $0x8] sm:$0xff] }
 0x7ff   :  { %v1055_v30 = vrot.slane %v1652_v28, 4  ;;  %1053 = vst.msk [vmem:[#allocation2] sm:$0x30] %vm780_vm5, %v1652_v28  ;;  %1576 = vmatmul.msk.f32.gmra.mxu1 %vm249_vm3, %v939_v29 }
 0x801   :  { %1579 = vmatmul.msk.f32.vlgmr.msrb.gmra.mxu3 %vm249_vm3, %v1055_v30 }
 0x802   :  { %1309 = vmatpush.msrb.mxu3 %v2363_v40 }
 0x804   :  { %1310 = vmatpush.msrb.mxu3 %v2365_v41 }
 0x806   :  { %1311 = vmatpush.msrb.mxu3 %v2369_v42 }
 0x808   :  { %1312 = vmatpush.msrb.mxu3 %v2375_v43 }
 0x87c   :  { %v969_v44 = vpop.f32.mrf.mxu1 }
 0x87d   :  { %v970_v45 = vadd.f32 %v2337_v0, %v969_v44 }
 0x884   :  { %v1075_v35 = vpop.f32.mrf.mxu3 }
 0x885   :  { %v1079_v36 = vrot.slane %v1075_v35, 2 }
 0x887   :  { %v1081_v37 = vadd.f32 %v1079_v36, %v967_v3 }
 0x889   :  { %1653 = vtanh.f32 %v1081_v37  ;;  %v1466_v37 = vld [vmem:[#allocation15 + $0x18] sm:$0xff] }
 0x88f   :  { %v1654_v38 = vpop.eup %1653 }
 0x890   :  { %v1085_v15 = vrot.slane %v1654_v38, 6  ;;  %1083 = vst.msk [vmem:[#allocation2] sm:$0xc0] %vm811_vm6, %v1654_v38  ;;  %v1465_v38 = vld [vmem:[#allocation15 + $0x10] sm:$0xff] }
 0x892   :  { %1580 = vmatmul.msk.f32.vlgmr.msrb.gmra.mxu0 %vm249_vm3, %v1085_v15  ;;  %v1464_v15 = vld [vmem:[#allocation15 + $0x8] sm:$0xff] }
 0x893   :  { %1421 = vmatpush.msrb.mxu0 %v2363_v40 }
 0x895   :  { %1422 = vmatpush.msrb.mxu0 %v2365_v41 }
 0x897   :  { %v1209_v39 = vld [vmem:[#allocation2] sm:$0xff]  ;;  %1423 = vmatpush.msrb.mxu0 %v2369_v42 }
 0x899   :  { %1424 = vmatpush.msrb.mxu0 %v2375_v43 }
 0x89a   :  { %1584 = vmatmul.msk.f32.vlgmr.msra.gmra.mxu0 %vm249_vm3, %v1209_v39  ;;  %v1463_v39 = vld [vmem:[#allocation15] sm:$0xff] }
 0x90f   :  { %v1105_v46 = vpop.f32.mrf.mxu0 }
 0x910   :  { %v1108_v47 = vadd.f32 %v1105_v46, %v970_v45 }
 0x912   :  { %1655 = vtanh.f32 %v1108_v47  ;;  %v1497_v47 = vld [vmem:[%s2455_s15 + $0x8] sm:$0xff] }
 0x917   :  { %v1237_v53 = vpop.f32.mrf.mxu0 }
 0x918   :  { %v1656_v48 = vpop.eup %1655  ;;  %v1238_v55 = vadd.f32 %v1612_v52, %v1237_v53  ;;  %v1614_v53 = vld [vmem:[#allocation18] ss:$0 sm:$0xff] }
 0x919   :  { %1110 = vst.msk [vmem:[#allocation2 + $0x8] sm:$0x3] %vm275_vm2, %v1656_v48  ;;  %1581 = vmatmul.msk.f32.vlgmr.msra.gmra.mxu2 %vm249_vm3, %v1656_v48  ;;  %v1496_v48 = vld [vmem:[%s2455_s15] sm:$0xff] }
 0x91a   :  { %1338 = vmatpush.msra.mxu2 %v2363_v40 }
 0x91c   :  { %1339 = vmatpush.msra.mxu2 %v2365_v41 }
 0x91e   :  { %1340 = vmatpush.msra.mxu2 %v2369_v42 }
 0x920   :  { %1341 = vmatpush.msra.mxu2 %v2375_v43 }
 0x921   :  { %1259 = vmatmul.f32.vlgmr.msrb.gmra.mxu2 %v1969_v10 }
 0x922   :  { %1450 = vmatpush.msrb.mxu2 %v2363_v40 }
 0x924   :  { %1451 = vmatpush.msrb.mxu2 %v2365_v41 }
 0x926   :  { %1452 = vmatpush.msrb.mxu2 %v2369_v42 }
 0x928   :  { %1453 = vmatpush.msrb.mxu2 %v2375_v43 }
 0x99c   :  { %v1131_v49 = vpop.f32.mrf.mxu2 }
 0x99d   :  { %v1135_v50 = vrot.slane %v1131_v49, 6  ;;  %v1613_v49 = vld [vmem:[#allocation17] ss:$0 sm:$0xff] }
 0x99f   :  { %v1137_v51 = vadd.f32 %v1135_v50, %v970_v45 }
 0x9a1   :  { %1657 = vtanh.f32 %v1137_v51 }
 0x9a4   :  { %v1260_v54 = vpop.f32.mrf.mxu2 }
 0x9a5   :  { %v1263_v56 = vadd.f32 %v1260_v54, %v1238_v55 }
 0x9a7   :  { %v1658_v10 = vpop.eup %1657  ;;  %1659 = vtanh.f32 %v1263_v56 }
 0x9a8   :  { %v1141_v57 = vrot.slane %v1658_v10, 2  ;;  %1139 = vst.msk [vmem:[#allocation2 + $0x8] sm:$0xc] %vm749_vm4, %v1658_v10 }
 0x9aa   :  { %1582 = vmatmul.msk.f32.vlgmr.msrb.gmra.mxu1 %vm249_vm3, %v1141_v57 }
 0x9ab   :  { %1367 = vmatpush.msrb.mxu1 %v2363_v40 }
 0x9ad   :  { %1368 = vmatpush.msrb.mxu1 %v2365_v41  ;;  %v1660_v58 = vpop.eup %1659 }
 0x9af   :  { %1369 = vmatpush.msrb.mxu1 %v2369_v42 }
 0x9b1   :  { %1370 = vmatpush.msrb.mxu1 %v2375_v43 }
 0x9b2   :  { %1586 = vmatmul.msk.f32.vlgmr.msra.gmra.mxu1 %vm249_vm3, %v1660_v58 }
 0x9b3   :  { %1487 = vmatpush.msra.mxu1 %v1466_v37 }
 0x9b5   :  { %1488 = vmatpush.msra.mxu1 %v1465_v38 }
 0x9b7   :  { %1489 = vmatpush.msra.mxu1 %v1464_v15 }
 0x9b9   :  { %1490 = vmatpush.msra.mxu1 %v1463_v39 }
 0xa27   :  { %v1161_v59 = vpop.f32.mrf.mxu1 }
 0xa28   :  { %v1165_v60 = vrot.slane %v1161_v59, 4 }
 0xa2a   :  { %v1167_v61 = vadd.f32 %v1165_v60, %v970_v45 }
 0xa2c   :  { %1661 = vtanh.f32 %v1167_v61 }
 0xa2f   :  { %v1285_v62 = vpop.f32.mrf.mxu1 }
 0xa30   :  { %v1289_v63 = vrot.slane %v1285_v62, 6 }
 0xa32   :  { %v1662_v0 = vpop.eup %1661  ;;  %v1291_v1 = vadd.f32 %v1289_v63, %v1238_v55 }
 0xa33   :  { %v1171_v2 = vrot.slane %v1662_v0, 4  ;;  %1169 = vst.msk [vmem:[#allocation2 + $0x8] sm:$0x30] %vm780_vm5, %v1662_v0 }
 0xa34   :  { %1663 = vtanh.f32 %v1291_v1 }
 0xa35   :  { %1583 = vmatmul.msk.f32.vlgmr.msra.gmra.mxu3 %vm249_vm3, %v1171_v2 }
 0xa36   :  { %1392 = vmatpush.msra.mxu3 %v2363_v40  ;;  %v1499_v40 = vld [vmem:[%s2455_s15 + $0x18] sm:$0xff] }
 0xa38   :  { %1393 = vmatpush.msra.mxu3 %v2365_v41  ;;  %v1498_v41 = vld [vmem:[%s2455_s15 + $0x10] sm:$0xff] }
 0xa3a   :  { %v1664_v3 = vpop.eup %1663  ;;  %1394 = vmatpush.msra.mxu3 %v2369_v42 }
 0xa3b   :  { %v1294_v4 = vrot.slane %v1664_v3, 2 }
 0xa3c   :  { %1395 = vmatpush.msra.mxu3 %v2375_v43 }
 0xa3d   :  { %1587 = vmatmul.msk.f32.vlgmr.msrb.gmra.mxu3 %vm249_vm3, %v1294_v4 }
 0xa3e   :  { %1519 = vmatpush.msrb.mxu3 %v1499_v40 }
 0xa40   :  { %1520 = vmatpush.msrb.mxu3 %v1498_v41 }
 0xa42   :  { %1521 = vmatpush.msrb.mxu3 %v1497_v47 }
 0xa44   :  { %1522 = vmatpush.msrb.mxu3 %v1496_v48 }
 0xab8   :  { %v1191_v5 = vpop.f32.mrf.mxu3 }
 0xab9   :  { %v1195_v6 = vrot.slane %v1191_v5, 2 }
 0xabb   :  { %v1197_v7 = vadd.f32 %v1195_v6, %v970_v45 }
 0xabd   :  { %1665 = vtanh.f32 %v1197_v7 }
 0xac0   :  { %v1314_v8 = vpop.f32.mrf.mxu3 }
 0xac1   :  { %v1318_v9 = vrot.slane %v1314_v8, 4 }
 0xac3   :  { %v1666_v11 = vpop.eup %1665  ;;  %v1320_v12 = vadd.f32 %v1318_v9, %v1238_v55 }
 0xac4   :  { %1199 = vst.msk [vmem:[#allocation2 + $0x8] sm:$0xc0] %vm811_vm6, %v1666_v11 }
 0xac5   :  { %1667 = vtanh.f32 %v1320_v12 }
 0xacb   :  { %v1668_v13 = vpop.eup %1667  ;;  %v1210_v14 = vld [vmem:[#allocation2 + $0x8] sm:$0xff] }
 0xacc   :  { %v1323_v16 = vrot.slane %v1668_v13, 4  ;;  %1585 = vmatmul.msk.f32.gmra.mxu0 %vm249_vm3, %v1210_v14 }
 0xace   :  { %1588 = vmatmul.msk.f32.vlgmr.msra.gmra.mxu2 %vm249_vm3, %v1323_v16 }
 0xb49   :  { %v1240_v22 = vpop.f32.mrf.mxu0 }
 0xb4a   :  { %v1241_v23 = vadd.f32 %v1612_v52, %v1240_v22 }
 0xb51   :  { %v1343_v17 = vpop.f32.mrf.mxu2 }
 0xb52   :  { %v1347_v18 = vrot.slane %v1343_v17, 2 }
 0xb54   :  { %v1349_v19 = vadd.f32 %v1347_v18, %v1238_v55 }
 0xb56   :  { %1669 = vtanh.f32 %v1349_v19 }
 0xb5c   :  { %v1670_v20 = vpop.eup %1669 }
 0xb5d   :  { %v1352_v21 = vrot.slane %v1670_v20, 6 }
 0xb5f   :  { %1589 = vmatmul.msk.f32.vlgmr.msrb.gmra.mxu1 %vm249_vm3, %v1352_v21 }
 0xbdc   :  { %v1372_v24 = vpop.f32.mrf.mxu1 }
 0xbdd   :  { %v1375_v25 = vadd.f32 %v1372_v24, %v1241_v23 }
 0xbdf   :  { %1671 = vtanh.f32 %v1375_v25 }
 0xbe5   :  { %v1672_v26 = vpop.eup %1671 }
 0xbe6   :  { %1590 = vmatmul.msk.f32.vlgmr.msra.gmra.mxu3 %vm249_vm3, %v1672_v26 }
 0xc69   :  { %v1397_v27 = vpop.f32.mrf.mxu3 }
 0xc6a   :  { %v1401_v28 = vrot.slane %v1397_v27, 6 }
 0xc6c   :  { %v1403_v29 = vadd.f32 %v1401_v28, %v1241_v23 }
 0xc6e   :  { %1673 = vtanh.f32 %v1403_v29 }
 0xc74   :  { %v1674_v30 = vpop.eup %1673 }
 0xc75   :  { %v1406_v31 = vrot.slane %v1674_v30, 2 }
 0xc77   :  { %1591 = vmatmul.msk.f32.vlgmr.msrb.gmra.mxu0 %vm249_vm3, %v1406_v31 }
 0xcf4   :  { %v1426_v32 = vpop.f32.mrf.mxu0 }
 0xcf5   :  { %v1430_v33 = vrot.slane %v1426_v32, 4 }
 0xcf7   :  { %v1432_v34 = vadd.f32 %v1430_v33, %v1241_v23 }
 0xcf9   :  { %1675 = vtanh.f32 %v1432_v34 }
 0xcff   :  { %v1676_v35 = vpop.eup %1675 }
 0xd00   :  { %v1435_v36 = vrot.slane %v1676_v35, 4 }
 0xd02   :  { %1592 = vmatmul.msk.f32.vlgmr.msrb.gmra.mxu2 %vm249_vm3, %v1435_v36 }
 0xd85   :  { %v1455_v42 = vpop.f32.mrf.mxu2 }
 0xd86   :  { %v1459_v43 = vrot.slane %v1455_v42, 2 }
 0xd88   :  { %v1461_v44 = vadd.f32 %v1459_v43, %v1241_v23 }
 0xd8a   :  { %1677 = vtanh.f32 %v1461_v44 }
 0xd90   :  { %v1678_v45 = vpop.eup %1677 }
 0xd91   :  { %v1472_v46 = vrot.slane %v1678_v45, 6 }
 0xd93   :  { %1593 = vmatmul.msk.f32.vlgmr.msra.gmra.mxu1 %vm249_vm3, %v1472_v46 }
 0xe10   :  { %v1492_v50 = vpop.f32.mrf.mxu1 }
 0xe11   :  { %v1493_v51 = vadd.f32 %v1613_v49, %v1492_v50 }
 0xe13   :  { %v1495_v52 = vmax.f32 %v1493_v51, 0.0 }
 0xe15   :  { %1594 = vmatmul.msk.f32.vlgmr.msrb.gmra.mxu3 %vm249_vm3, %v1495_v52 }
 0xe98   :  { %v1524_v54 = vpop.f32.mrf.mxu3 }
 0xe99   :  { %v1525_v55 = vadd.f32 %v1614_v53, %v1524_v54 }
 0xe9b   :  { %1528 = vst.msk [vmem:[#allocation20] sm:$0x3] %vm1527_vm7, %v1525_v55 }
 0xe9c   :  { %1539 = dma.vmem_to_hbm [thread:$0]  %s1535_s19, 32, %s1537_s27, [#allocation5]  }
 0xe9d   :  { %1955 = dma.done.wait [#allocation5], 32  }
 0xe9e   :  { %1956 = vsyncadd [#allocation5], 4294967264 }
 0xe9f   :  { %1544 = vsyncpa [#allocation4], 1 }
 0xea0   :  { %1545 = vsyncpa [#allocation7], 1 }
 0xea1   :  { %1546 = vsyncpa [#allocation10], 1 }
 0xea2   :  { %1547 = vsyncpa [#allocation13], 1 }
 0xea3   :  { %1548 = vsyncpa [#allocation16], 1 }
 0xea4   :  { %1549 = vsyncpa [#allocation19], 1 }
 0xea5   :  { %1550 = vsyncpa [#allocation5], 1 }

</bundles_post_ra>
